<compile_context>
chip_gen: v7x
topology: tpu7x:2x2x1
jax: 0.10.0
libtpu: 0.0.40
codegen_flags: <defaults>
</compile_context>

<pallas_src>
import functools

import jax
import jax.numpy as jnp
from jax.experimental import pallas as pl
from jax.experimental.pallas import tpu as pltpu


# ---------------------------------------------------------------------------
# Pallas kernel: fused sum_i(A_i @ W_i) + bias + activation
# ---------------------------------------------------------------------------
def _fused_matmul_kernel(*refs, n_in, activation):
    """o = act(sum_i a_i @ b_i + bias).

    refs = (a_0..a_{n-1}, b_0..b_{n-1}, bias, out)
    a_i: (TM, K_i) bf16, b_i: (K_i, Np) bf16 (resident), bias: (1, Np) f32.
    """
    a_refs = refs[:n_in]
    b_refs = refs[n_in:2 * n_in]
    bias_ref = refs[2 * n_in]
    o_ref = refs[2 * n_in + 1]

    acc = jnp.dot(a_refs[0][...], b_refs[0][...],
                  preferred_element_type=jnp.float32)
    for i in range(1, n_in):
        acc += jnp.dot(a_refs[i][...], b_refs[i][...],
                       preferred_element_type=jnp.float32)
    acc = acc + bias_ref[...]
    if activation == "relu":
        acc = jnp.maximum(acc, 0.0)
    elif activation == "sigmoid":
        acc = jax.nn.sigmoid(acc)
    o_ref[...] = acc.astype(o_ref.dtype)


def _round_up(x, m):
    return ((x + m - 1) // m) * m


def fused_matmul_bias_act(a_list, b_list, bias, activation="none", *,
                          out_dtype=jnp.bfloat16, tm=512):
    """Fused act(sum_i (M,K_i)@(K_i,Cout) + bias) on the MXU.

    * M is tiled with TM<=512 blocks ("parallel" grid axis -> megacore).
    * Cout is padded up to a multiple of 128 for lane-dense output stores.
    * a_i/b_i are cast to bf16; accumulation / bias / activation are in f32.
    """
    n_in = len(a_list)
    assert n_in == len(b_list) and n_in >= 1
    M = a_list[0].shape[0]
    Cout = b_list[0].shape[1]

    n_pad = _round_up(Cout, 128)
    TM = min(tm, _round_up(M, 8))
    m_pad = _round_up(M, TM)

    a_ps, b_ps = [], []
    for a, b in zip(a_list, b_list):
        assert a.shape[0] == M and a.shape[1] == b.shape[0] and b.shape[1] == Cout
        a_p = a.astype(jnp.bfloat16)
        if m_pad != M:
            a_p = jnp.pad(a_p, ((0, m_pad - M), (0, 0)))
        b_p = b.astype(jnp.bfloat16)
        if n_pad != Cout:
            b_p = jnp.pad(b_p, ((0, 0), (0, n_pad - Cout)))
        a_ps.append(a_p)
        b_ps.append(b_p)

    bias_p = bias.astype(jnp.float32).reshape(1, Cout)
    if n_pad != Cout:
        bias_p = jnp.pad(bias_p, ((0, 0), (0, n_pad - Cout)))

    in_specs = (
        [pl.BlockSpec((TM, a.shape[1]), lambda i: (i, 0)) for a in a_ps]      # patches (tiled)
        + [pl.BlockSpec((b.shape[0], n_pad), lambda i: (0, 0)) for b in b_ps]  # weights (resident)
        + [pl.BlockSpec((1, n_pad), lambda i: (0, 0))]                         # bias (resident)
    )

    kernel = functools.partial(_fused_matmul_kernel, n_in=n_in,
                               activation=activation)
    out = pl.pallas_call(
        kernel,
        out_shape=jax.ShapeDtypeStruct((m_pad, n_pad), out_dtype),
        grid=(m_pad // TM,),
        in_specs=in_specs,
        out_specs=pl.BlockSpec((TM, n_pad), lambda i: (i, 0)),
        compiler_params=pltpu.CompilerParams(
            dimension_semantics=("parallel",),
            vmem_limit_bytes=32 * 1024 * 1024,
        ),
    )(*a_ps, *b_ps, bias_p)
    return out[:M, :Cout]


# ---------------------------------------------------------------------------
# Convolution = im2col (glue, NHWC) + Pallas fused matmul
# ---------------------------------------------------------------------------
def _im2col_nhwc(x, kh, kw, stride, dilation):
    """x: (N,H,W,C) -> (N*Ho*Wo, kh*kw*C), feature ordering (kh, kw, C)."""
    N, H, W, C = x.shape
    if kh == 1 and kw == 1 and stride == 1:
        return x.reshape(N * H * W, C), H, W     # 1x1 conv: pure reshape
    pad_h = dilation * (kh - 1) // 2
    pad_w = dilation * (kw - 1) // 2
    xp = jnp.pad(x, ((0, 0), (pad_h, pad_h), (pad_w, pad_w), (0, 0)))
    Ho = (H + 2 * pad_h - dilation * (kh - 1) - 1) // stride + 1
    Wo = (W + 2 * pad_w - dilation * (kw - 1) - 1) // stride + 1
    cols = []
    for i in range(kh):
        for j in range(kw):
            hs = i * dilation
            ws = j * dilation
            patch = xp[:,
                       hs:hs + stride * (Ho - 1) + 1:stride,
                       ws:ws + stride * (Wo - 1) + 1:stride,
                       :]
            cols.append(patch)                         # (N, Ho, Wo, C)
    col = jnp.stack(cols, axis=3)                      # (N, Ho, Wo, kh*kw, C)
    a = col.reshape(N * Ho * Wo, kh * kw * C)
    return a, Ho, Wo


def _w_to_mat(w):
    """(Cout,Cin,kh,kw) -> (kh*kw*Cin, Cout), matching im2col feature order."""
    Cout, Cin, kh, kw = w.shape
    return w.transpose(2, 3, 1, 0).reshape(kh * kw * Cin, Cout)


def conv2d(x, w, b, *, stride=1, dilation=1, activation="none",
           out_dtype=jnp.bfloat16):
    """PyTorch-style Conv2d ('same' zero pad) + bias + activation, NHWC.

    x: (N,H,W,Cin), w: (Cout,Cin,kh,kw), b: (Cout,) -> (N,Ho,Wo,Cout)
    """
    N, H, W, Cin = x.shape
    Cout, Cin2, kh, kw = w.shape
    assert Cin == Cin2
    a, Ho, Wo = _im2col_nhwc(x, kh, kw, stride, dilation)
    out = fused_matmul_bias_act([a], [_w_to_mat(w)], b, activation,
                                out_dtype=out_dtype)
    return out.reshape(N, Ho, Wo, Cout)


def conv2d_concat(xs, ws, b, *, stride=1, dilation=1, activation="none",
                  out_dtype=jnp.bfloat16):
    """conv(concat(xs, axis=-1)) without materializing the concat in HBM.

    xs: list of NHWC inputs with identical spatial dims.
    ws: list of (Cout, Cin_i, kh, kw) weight slices along Cin.
    """
    a_list, b_list = [], []
    Ho = Wo = None
    for x, w in zip(xs, ws):
        _, _, kh, kw = w.shape
        a, Ho, Wo = _im2col_nhwc(x, kh, kw, stride, dilation)
        a_list.append(a)
        b_list.append(_w_to_mat(w))
    N = xs[0].shape[0]
    Cout = ws[0].shape[0]
    out = fused_matmul_bias_act(a_list, b_list, b, activation,
                                out_dtype=out_dtype)
    return out.reshape(N, Ho, Wo, Cout)


def upsample_nearest(x, factor):
    """NHWC nearest-neighbor upsample."""
    x = jnp.repeat(x, factor, axis=1)
    return jnp.repeat(x, factor, axis=2)


# ---------------------------------------------------------------------------
# Model: compact DeepLabV3Plus-style encoder / ASPP / decoder, sigmoid head
# ---------------------------------------------------------------------------
def _conv_params(key, cout, cin, kh, kw):
    fan_in = cin * kh * kw
    w = jax.random.normal(key, (cout, cin, kh, kw), jnp.float32) * (2.0 / fan_in) ** 0.5
    b = jnp.zeros((cout,), jnp.float32)
    return {"w": w, "b": b}


def init_params(key):
    ks = jax.random.split(key, 11)
    return {
        "stem":      _conv_params(ks[0], 16, 1, 3, 3),    # /2
        "enc1":      _conv_params(ks[1], 32, 16, 3, 3),   # /4 (low-level feats)
        "enc2":      _conv_params(ks[2], 64, 32, 3, 3),   # /8 (high-level feats)
        "aspp1":     _conv_params(ks[3], 32, 64, 1, 1),
        "aspp2":     _conv_params(ks[4], 32, 64, 3, 3),   # dilation 2
        "aspp3":     _conv_params(ks[5], 32, 64, 3, 3),   # dilation 4
        "aspp_pool": _conv_params(ks[6], 32, 64, 1, 1),
        "aspp_proj": _conv_params(ks[7], 32, 128, 1, 1),
        "low_proj":  _conv_params(ks[8], 16, 32, 1, 1),
        "dec":       _conv_params(ks[9], 32, 48, 3, 3),
        "head":      _conv_params(ks[10], 1, 32, 1, 1),
    }


def segmentation_forward(params, x):
    """x: (1, 1, H, W) float32 (batch=1, single channel, as the torch forward
    enforces via `img[0:1].unsqueeze(0)`). Returns (1, 1, H, W) in [0, 1]."""
    assert x.shape[0] == 1, "torch forward enforces batch=1"
    # NCHW -> NHWC once at entry (internal layout is channels-last).
    x = jnp.transpose(x, (0, 2, 3, 1))

    # Encoder
    stem = conv2d(x,    **params["stem"], stride=2, activation="relu")   # (1,H/2,W/2,16)
    low  = conv2d(stem, **params["enc1"], stride=2, activation="relu")   # (1,H/4,W/4,32)
    high = conv2d(low,  **params["enc2"], stride=2, activation="relu")   # (1,H/8,W/8,64)

    # ASPP branches (each 64 -> 32 channels).
    a1 = conv2d(high, **params["aspp1"], activation="relu")
    a2 = conv2d(high, **params["aspp2"], dilation=2, activation="relu")
    a3 = conv2d(high, **params["aspp3"], dilation=4, activation="relu")

    # Global-pool branch in plain jnp (a 1x64 @ 64x32 matmul is pure launch
    # overhead as a pallas_call). Its contribution is spatially constant, so
    # it is folded *exactly* into the projection bias instead of being
    # broadcast + concatenated at full resolution.
    gp = jnp.mean(high.astype(jnp.float32), axis=(1, 2))                 # (1,64)
    wp = params["aspp_pool"]["w"][:, :, 0, 0]                            # (32,64)
    gp = jnp.maximum(gp @ wp.T + params["aspp_pool"]["b"], 0.0)          # (1,32)

    w_proj = params["aspp_proj"]["w"][:, :, 0, 0]                        # (32,128)
    bias_eff = params["aspp_proj"]["b"] + (gp @ w_proj[:, 96:128].T)[0]  # (32,)

    # Fused ASPP projection: relu(a1@W1 + a2@W2 + a3@W3 + bias_eff), i.e. the
    # concat([a1,a2,a3,gp]) -> 1x1 conv without materializing the concat.
    N, Hh, Wh, _ = a1.shape
    M = N * Hh * Wh
    aspp = fused_matmul_bias_act(
        [a1.reshape(M, 32), a2.reshape(M, 32), a3.reshape(M, 32)],
        [w_proj[:, 0:32].T, w_proj[:, 32:64].T, w_proj[:, 64:96].T],
        bias_eff, "relu", out_dtype=jnp.bfloat16,
    ).reshape(N, Hh, Wh, 32)

    # Decoder: concat([upsampled_aspp, low_proj]) -> 3x3 conv, with the concat
    # fused into the conv (two im2col operands summed in-kernel).
    up = upsample_nearest(aspp, 2)                                       # to /4
    lowp = conv2d(low, **params["low_proj"], activation="relu")          # (1,·,·,16)
    w_dec = params["dec"]["w"]                                           # (32,48,3,3)
    dec = conv2d_concat([up, lowp], [w_dec[:, :32], w_dec[:, 32:]],
                        params["dec"]["b"], activation="relu")           # (1,·,·,32)

    # Head: sigmoid fused into the 1x1 conv (exact: sigmoid commutes with the
    # nearest-neighbor upsample), then upsample to input resolution.
    prob = conv2d(dec, **params["head"], activation="sigmoid",
                  out_dtype=jnp.float32)                                 # (1,·,·,1)
    prob = upsample_nearest(prob, 4)                                     # (1,H,W,1)

    # NHWC -> NCHW at exit.
    return jnp.transpose(prob, (0, 3, 1, 2))


if __name__ == "__main__":
    key = jax.random.PRNGKey(0)
    pkey, xkey = jax.random.split(key)
    params = init_params(pkey)

    # Synthetic preprocessed input (grayscale, batch 1) at a small 32x32
    # resolution standing in for the real 512x512.
    x = jax.random.uniform(xkey, (1, 1, 32, 32), dtype=jnp.float32)

    out = jax.jit(segmentation_forward)(params, x)
    out = jax.block_until_ready(out)

    assert out.shape == (1, 1, 32, 32), out.shape
    assert out.dtype == jnp.float32
    assert bool(jnp.all((out >= 0.0) & (out <= 1.0)))
    print("KERNEL_OK")
</pallas_src>

<mosaic_0001>
module attributes {stable_mosaic.version = 11 : i64} {
  func.func @_fused_matmul_kernel(%arg0: i32, %arg1: memref<256x9xbf16, #tpu.memory_space<vmem>>, %arg2: memref<9x128xbf16, #tpu.memory_space<vmem>>, %arg3: memref<1x128xf32, #tpu.memory_space<vmem>>, %arg4: memref<256x128xbf16, #tpu.memory_space<vmem>>) attributes {dimension_semantics = [#tpu.dimension_semantics<parallel>], iteration_bounds = array<i64: 1>, scalar_prefetch = 0 : i64, scratch_operands = 0 : i64, tpu.core_type = #tpu.core_type<tc>, window_params = [{transform_indices = @transform_0, window_bounds = array<i64: 256, 9>}, {pipeline_mode = #tpu.pipeline_mode<synchronous>, transform_indices = @transform_1, window_bounds = array<i64: 9, 128>}, {pipeline_mode = #tpu.pipeline_mode<synchronous>, transform_indices = @transform_2, window_bounds = array<i64: 1, 128>}, {transform_indices = @transform_3, window_bounds = array<i64: 256, 128>}]} {
    %c0 = arith.constant 0 : index
    %c0_0 = arith.constant 0 : index
    %0 = vector.load %arg1[%c0, %c0_0] : memref<256x9xbf16, #tpu.memory_space<vmem>>, vector<256x9xbf16>
    %c0_1 = arith.constant 0 : index
    %c0_2 = arith.constant 0 : index
    %1 = vector.load %arg2[%c0_1, %c0_2] : memref<9x128xbf16, #tpu.memory_space<vmem>>, vector<9x128xbf16>
    %cst = arith.constant dense<0.000000e+00> : vector<256x128xf32>
    %2 = tpu.matmul %0, %1, %cst {dimension_numbers = #tpu.dot_dimension_numbers<[1], [0], [0], [1], [0, 0, 1, 1], [], []>} : vector<256x9xbf16>, vector<9x128xbf16>, vector<256x128xf32> -> vector<256x128xf32>
    %c0_3 = arith.constant 0 : index
    %c0_4 = arith.constant 0 : index
    %3 = vector.load %arg3[%c0_3, %c0_4] : memref<1x128xf32, #tpu.memory_space<vmem>>, vector<1x128xf32>
    %4 = vector.broadcast %3 : vector<1x128xf32> to vector<256x128xf32>
    %5 = arith.addf %2, %4 : vector<256x128xf32>
    %cst_5 = arith.constant 0.000000e+00 : f32
    %6 = vector.broadcast %cst_5 : f32 to vector<256x128xf32>
    %7 = arith.maximumf %5, %6 : vector<256x128xf32>
    %8 = arith.truncf %7 : vector<256x128xf32> to vector<256x128xbf16>
    %c0_6 = arith.constant 0 : index
    %c0_7 = arith.constant 0 : index
    %9 = vector.load %arg4[%c0_6, %c0_7] : memref<256x128xbf16, #tpu.memory_space<vmem>>, vector<256x128xbf16>
    tpu.vector_store %arg4[%c0_6, %c0_7], %8 {strides = array<i32>} : memref<256x128xbf16, #tpu.memory_space<vmem>>, vector<256x128xbf16>,
    return
  }
  func.func @transform_0(%arg0: i32) -> (i32, i32) {
    %c0_i32 = arith.constant 0 : i32
    %c0_i32_0 = arith.constant 0 : i32
    return %arg0, %c0_i32 : i32, i32
  }
  func.func @transform_1(%arg0: i32) -> (i32, i32) {
    %c0_i32 = arith.constant 0 : i32
    %c0_i32_0 = arith.constant 0 : i32
    %c0_i32_1 = arith.constant 0 : i32
    return %c0_i32, %c0_i32_0 : i32, i32
  }
  func.func @transform_2(%arg0: i32) -> (i32, i32) {
    %c0_i32 = arith.constant 0 : i32
    %c0_i32_0 = arith.constant 0 : i32
    %c0_i32_1 = arith.constant 0 : i32
    return %c0_i32, %c0_i32_0 : i32, i32
  }
  func.func @transform_3(%arg0: i32) -> (i32, i32) {
    %c0_i32 = arith.constant 0 : i32
    %c0_i32_0 = arith.constant 0 : i32
    return %arg0, %c0_i32 : i32, i32
  }
}

module attributes {stable_mosaic.version = 11 : i64} {
  func.func @_fused_matmul_kernel(%arg0: i32, %arg1: memref<64x144xbf16, #tpu.memory_space<vmem>>, %arg2: memref<144x128xbf16, #tpu.memory_space<vmem>>, %arg3: memref<1x128xf32, #tpu.memory_space<vmem>>, %arg4: memref<64x128xbf16, #tpu.memory_space<vmem>>) attributes {dimension_semantics = [#tpu.dimension_semantics<parallel>], iteration_bounds = array<i64: 1>, scalar_prefetch = 0 : i64, scratch_operands = 0 : i64, tpu.core_type = #tpu.core_type<tc>, window_params = [{transform_indices = @transform_0, window_bounds = array<i64: 64, 144>}, {pipeline_mode = #tpu.pipeline_mode<synchronous>, transform_indices = @transform_1, window_bounds = array<i64: 144, 128>}, {pipeline_mode = #tpu.pipeline_mode<synchronous>, transform_indices = @transform_2, window_bounds = array<i64: 1, 128>}, {transform_indices = @transform_3, window_bounds = array<i64: 64, 128>}]} {
    %c0 = arith.constant 0 : index
    %c0_0 = arith.constant 0 : index
    %0 = vector.load %arg1[%c0, %c0_0] : memref<64x144xbf16, #tpu.memory_space<vmem>>, vector<64x144xbf16>
    %c0_1 = arith.constant 0 : index
    %c0_2 = arith.constant 0 : index
    %1 = vector.load %arg2[%c0_1, %c0_2] : memref<144x128xbf16, #tpu.memory_space<vmem>>, vector<144x128xbf16>
    %cst = arith.constant dense<0.000000e+00> : vector<64x128xf32>
    %2 = tpu.matmul %0, %1, %cst {dimension_numbers = #tpu.dot_dimension_numbers<[1], [0], [0], [1], [0, 0, 1, 1], [], []>} : vector<64x144xbf16>, vector<144x128xbf16>, vector<64x128xf32> -> vector<64x128xf32>
    %c0_3 = arith.constant 0 : index
    %c0_4 = arith.constant 0 : index
    %3 = vector.load %arg3[%c0_3, %c0_4] : memref<1x128xf32, #tpu.memory_space<vmem>>, vector<1x128xf32>
    %4 = vector.broadcast %3 : vector<1x128xf32> to vector<64x128xf32>
    %5 = arith.addf %2, %4 : vector<64x128xf32>
    %cst_5 = arith.constant 0.000000e+00 : f32
    %6 = vector.broadcast %cst_5 : f32 to vector<64x128xf32>
    %7 = arith.maximumf %5, %6 : vector<64x128xf32>
    %8 = arith.truncf %7 : vector<64x128xf32> to vector<64x128xbf16>
    %c0_6 = arith.constant 0 : index
    %c0_7 = arith.constant 0 : index
    %9 = vector.load %arg4[%c0_6, %c0_7] : memref<64x128xbf16, #tpu.memory_space<vmem>>, vector<64x128xbf16>
    tpu.vector_store %arg4[%c0_6, %c0_7], %8 {strides = array<i32>} : memref<64x128xbf16, #tpu.memory_space<vmem>>, vector<64x128xbf16>,
    return
  }
  func.func @transform_0(%arg0: i32) -> (i32, i32) {
    %c0_i32 = arith.constant 0 : i32
    %c0_i32_0 = arith.constant 0 : i32
    return %arg0, %c0_i32 : i32, i32
  }
  func.func @transform_1(%arg0: i32) -> (i32, i32) {
    %c0_i32 = arith.constant 0 : i32
    %c0_i32_0 = arith.constant 0 : i32
    %c0_i32_1 = arith.constant 0 : i32
    return %c0_i32, %c0_i32_0 : i32, i32
  }
  func.func @transform_2(%arg0: i32) -> (i32, i32) {
    %c0_i32 = arith.constant 0 : i32
    %c0_i32_0 = arith.constant 0 : i32
    %c0_i32_1 = arith.constant 0 : i32
    return %c0_i32, %c0_i32_0 : i32, i32
  }
  func.func @transform_3(%arg0: i32) -> (i32, i32) {
    %c0_i32 = arith.constant 0 : i32
    %c0_i32_0 = arith.constant 0 : i32
    return %arg0, %c0_i32 : i32, i32
  }
}

module attributes {stable_mosaic.version = 11 : i64} {
  func.func @_fused_matmul_kernel(%arg0: i32, %arg1: memref<64x32xbf16, #tpu.memory_space<vmem>>, %arg2: memref<32x128xbf16, #tpu.memory_space<vmem>>, %arg3: memref<1x128xf32, #tpu.memory_space<vmem>>, %arg4: memref<64x128xbf16, #tpu.memory_space<vmem>>) attributes {dimension_semantics = [#tpu.dimension_semantics<parallel>], iteration_bounds = array<i64: 1>, scalar_prefetch = 0 : i64, scratch_operands = 0 : i64, tpu.core_type = #tpu.core_type<tc>, window_params = [{transform_indices = @transform_0, window_bounds = array<i64: 64, 32>}, {pipeline_mode = #tpu.pipeline_mode<synchronous>, transform_indices = @transform_1, window_bounds = array<i64: 32, 128>}, {pipeline_mode = #tpu.pipeline_mode<synchronous>, transform_indices = @transform_2, window_bounds = array<i64: 1, 128>}, {transform_indices = @transform_3, window_bounds = array<i64: 64, 128>}]} {
    %c0 = arith.constant 0 : index
    %c0_0 = arith.constant 0 : index
    %0 = vector.load %arg1[%c0, %c0_0] : memref<64x32xbf16, #tpu.memory_space<vmem>>, vector<64x32xbf16>
    %c0_1 = arith.constant 0 : index
    %c0_2 = arith.constant 0 : index
    %1 = vector.load %arg2[%c0_1, %c0_2] : memref<32x128xbf16, #tpu.memory_space<vmem>>, vector<32x128xbf16>
    %cst = arith.constant dense<0.000000e+00> : vector<64x128xf32>
    %2 = tpu.matmul %0, %1, %cst {dimension_numbers = #tpu.dot_dimension_numbers<[1], [0], [0], [1], [0, 0, 1, 1], [], []>} : vector<64x32xbf16>, vector<32x128xbf16>, vector<64x128xf32> -> vector<64x128xf32>
    %c0_3 = arith.constant 0 : index
    %c0_4 = arith.constant 0 : index
    %3 = vector.load %arg3[%c0_3, %c0_4] : memref<1x128xf32, #tpu.memory_space<vmem>>, vector<1x128xf32>
    %4 = vector.broadcast %3 : vector<1x128xf32> to vector<64x128xf32>
    %5 = arith.addf %2, %4 : vector<64x128xf32>
    %cst_5 = arith.constant 0.000000e+00 : f32
    %6 = vector.broadcast %cst_5 : f32 to vector<64x128xf32>
    %7 = arith.maximumf %5, %6 : vector<64x128xf32>
    %8 = arith.truncf %7 : vector<64x128xf32> to vector<64x128xbf16>
    %c0_6 = arith.constant 0 : index
    %c0_7 = arith.constant 0 : index
    %9 = vector.load %arg4[%c0_6, %c0_7] : memref<64x128xbf16, #tpu.memory_space<vmem>>, vector<64x128xbf16>
    tpu.vector_store %arg4[%c0_6, %c0_7], %8 {strides = array<i32>} : memref<64x128xbf16, #tpu.memory_space<vmem>>, vector<64x128xbf16>,
    return
  }
  func.func @transform_0(%arg0: i32) -> (i32, i32) {
    %c0_i32 = arith.constant 0 : i32
    %c0_i32_0 = arith.constant 0 : i32
    return %arg0, %c0_i32 : i32, i32
  }
  func.func @transform_1(%arg0: i32) -> (i32, i32) {
    %c0_i32 = arith.constant 0 : i32
    %c0_i32_0 = arith.constant 0 : i32
    %c0_i32_1 = arith.constant 0 : i32
    return %c0_i32, %c0_i32_0 : i32, i32
  }
  func.func @transform_2(%arg0: i32) -> (i32, i32) {
    %c0_i32 = arith.constant 0 : i32
    %c0_i32_0 = arith.constant 0 : i32
    %c0_i32_1 = arith.constant 0 : i32
    return %c0_i32, %c0_i32_0 : i32, i32
  }
  func.func @transform_3(%arg0: i32) -> (i32, i32) {
    %c0_i32 = arith.constant 0 : i32
    %c0_i32_0 = arith.constant 0 : i32
    return %arg0, %c0_i32 : i32, i32
  }
}

module attributes {stable_mosaic.version = 11 : i64} {
  func.func @_fused_matmul_kernel(%arg0: i32, %arg1: memref<16x288xbf16, #tpu.memory_space<vmem>>, %arg2: memref<288x128xbf16, #tpu.memory_space<vmem>>, %arg3: memref<1x128xf32, #tpu.memory_space<vmem>>, %arg4: memref<16x128xbf16, #tpu.memory_space<vmem>>) attributes {dimension_semantics = [#tpu.dimension_semantics<parallel>], iteration_bounds = array<i64: 1>, scalar_prefetch = 0 : i64, scratch_operands = 0 : i64, tpu.core_type = #tpu.core_type<tc>, window_params = [{transform_indices = @transform_0, window_bounds = array<i64: 16, 288>}, {pipeline_mode = #tpu.pipeline_mode<synchronous>, transform_indices = @transform_1, window_bounds = array<i64: 288, 128>}, {pipeline_mode = #tpu.pipeline_mode<synchronous>, transform_indices = @transform_2, window_bounds = array<i64: 1, 128>}, {transform_indices = @transform_3, window_bounds = array<i64: 16, 128>}]} {
    %c0 = arith.constant 0 : index
    %c0_0 = arith.constant 0 : index
    %0 = vector.load %arg1[%c0, %c0_0] : memref<16x288xbf16, #tpu.memory_space<vmem>>, vector<16x288xbf16>
    %c0_1 = arith.constant 0 : index
    %c0_2 = arith.constant 0 : index
    %1 = vector.load %arg2[%c0_1, %c0_2] : memref<288x128xbf16, #tpu.memory_space<vmem>>, vector<288x128xbf16>
    %cst = arith.constant dense<0.000000e+00> : vector<16x128xf32>
    %2 = tpu.matmul %0, %1, %cst {dimension_numbers = #tpu.dot_dimension_numbers<[1], [0], [0], [1], [0, 0, 1, 1], [], []>} : vector<16x288xbf16>, vector<288x128xbf16>, vector<16x128xf32> -> vector<16x128xf32>
    %c0_3 = arith.constant 0 : index
    %c0_4 = arith.constant 0 : index
    %3 = vector.load %arg3[%c0_3, %c0_4] : memref<1x128xf32, #tpu.memory_space<vmem>>, vector<1x128xf32>
    %4 = vector.broadcast %3 : vector<1x128xf32> to vector<16x128xf32>
    %5 = arith.addf %2, %4 : vector<16x128xf32>
    %cst_5 = arith.constant 0.000000e+00 : f32
    %6 = vector.broadcast %cst_5 : f32 to vector<16x128xf32>
    %7 = arith.maximumf %5, %6 : vector<16x128xf32>
    %8 = arith.truncf %7 : vector<16x128xf32> to vector<16x128xbf16>
    %c0_6 = arith.constant 0 : index
    %c0_7 = arith.constant 0 : index
    %9 = vector.load %arg4[%c0_6, %c0_7] : memref<16x128xbf16, #tpu.memory_space<vmem>>, vector<16x128xbf16>
    tpu.vector_store %arg4[%c0_6, %c0_7], %8 {strides = array<i32>} : memref<16x128xbf16, #tpu.memory_space<vmem>>, vector<16x128xbf16>,
    return
  }
  func.func @transform_0(%arg0: i32) -> (i32, i32) {
    %c0_i32 = arith.constant 0 : i32
    %c0_i32_0 = arith.constant 0 : i32
    return %arg0, %c0_i32 : i32, i32
  }
  func.func @transform_1(%arg0: i32) -> (i32, i32) {
    %c0_i32 = arith.constant 0 : i32
    %c0_i32_0 = arith.constant 0 : i32
    %c0_i32_1 = arith.constant 0 : i32
    return %c0_i32, %c0_i32_0 : i32, i32
  }
  func.func @transform_2(%arg0: i32) -> (i32, i32) {
    %c0_i32 = arith.constant 0 : i32
    %c0_i32_0 = arith.constant 0 : i32
    %c0_i32_1 = arith.constant 0 : i32
    return %c0_i32, %c0_i32_0 : i32, i32
  }
  func.func @transform_3(%arg0: i32) -> (i32, i32) {
    %c0_i32 = arith.constant 0 : i32
    %c0_i32_0 = arith.constant 0 : i32
    return %arg0, %c0_i32 : i32, i32
  }
}

module attributes {stable_mosaic.version = 11 : i64} {
  func.func @_fused_matmul_kernel(%arg0: i32, %arg1: memref<16x576xbf16, #tpu.memory_space<vmem>>, %arg2: memref<576x128xbf16, #tpu.memory_space<vmem>>, %arg3: memref<1x128xf32, #tpu.memory_space<vmem>>, %arg4: memref<16x128xbf16, #tpu.memory_space<vmem>>) attributes {dimension_semantics = [#tpu.dimension_semantics<parallel>], iteration_bounds = array<i64: 1>, scalar_prefetch = 0 : i64, scratch_operands = 0 : i64, tpu.core_type = #tpu.core_type<tc>, window_params = [{transform_indices = @transform_0, window_bounds = array<i64: 16, 576>}, {pipeline_mode = #tpu.pipeline_mode<synchronous>, transform_indices = @transform_1, window_bounds = array<i64: 576, 128>}, {pipeline_mode = #tpu.pipeline_mode<synchronous>, transform_indices = @transform_2, window_bounds = array<i64: 1, 128>}, {transform_indices = @transform_3, window_bounds = array<i64: 16, 128>}]} {
    %c0 = arith.constant 0 : index
    %c0_0 = arith.constant 0 : index
    %0 = vector.load %arg1[%c0, %c0_0] : memref<16x576xbf16, #tpu.memory_space<vmem>>, vector<16x576xbf16>
    %c0_1 = arith.constant 0 : index
    %c0_2 = arith.constant 0 : index
    %1 = vector.load %arg2[%c0_1, %c0_2] : memref<576x128xbf16, #tpu.memory_space<vmem>>, vector<576x128xbf16>
    %cst = arith.constant dense<0.000000e+00> : vector<16x128xf32>
    %2 = tpu.matmul %0, %1, %cst {dimension_numbers = #tpu.dot_dimension_numbers<[1], [0], [0], [1], [0, 0, 1, 1], [], []>} : vector<16x576xbf16>, vector<576x128xbf16>, vector<16x128xf32> -> vector<16x128xf32>
    %c0_3 = arith.constant 0 : index
    %c0_4 = arith.constant 0 : index
    %3 = vector.load %arg3[%c0_3, %c0_4] : memref<1x128xf32, #tpu.memory_space<vmem>>, vector<1x128xf32>
    %4 = vector.broadcast %3 : vector<1x128xf32> to vector<16x128xf32>
    %5 = arith.addf %2, %4 : vector<16x128xf32>
    %cst_5 = arith.constant 0.000000e+00 : f32
    %6 = vector.broadcast %cst_5 : f32 to vector<16x128xf32>
    %7 = arith.maximumf %5, %6 : vector<16x128xf32>
    %8 = arith.truncf %7 : vector<16x128xf32> to vector<16x128xbf16>
    %c0_6 = arith.constant 0 : index
    %c0_7 = arith.constant 0 : index
    %9 = vector.load %arg4[%c0_6, %c0_7] : memref<16x128xbf16, #tpu.memory_space<vmem>>, vector<16x128xbf16>
    tpu.vector_store %arg4[%c0_6, %c0_7], %8 {strides = array<i32>} : memref<16x128xbf16, #tpu.memory_space<vmem>>, vector<16x128xbf16>,
    return
  }
  func.func @transform_0(%arg0: i32) -> (i32, i32) {
    %c0_i32 = arith.constant 0 : i32
    %c0_i32_0 = arith.constant 0 : i32
    return %arg0, %c0_i32 : i32, i32
  }
  func.func @transform_1(%arg0: i32) -> (i32, i32) {
    %c0_i32 = arith.constant 0 : i32
    %c0_i32_0 = arith.constant 0 : i32
    %c0_i32_1 = arith.constant 0 : i32
    return %c0_i32, %c0_i32_0 : i32, i32
  }
  func.func @transform_2(%arg0: i32) -> (i32, i32) {
    %c0_i32 = arith.constant 0 : i32
    %c0_i32_0 = arith.constant 0 : i32
    %c0_i32_1 = arith.constant 0 : i32
    return %c0_i32, %c0_i32_0 : i32, i32
  }
  func.func @transform_3(%arg0: i32) -> (i32, i32) {
    %c0_i32 = arith.constant 0 : i32
    %c0_i32_0 = arith.constant 0 : i32
    return %arg0, %c0_i32 : i32, i32
  }
}

module attributes {stable_mosaic.version = 11 : i64} {
  func.func @_fused_matmul_kernel(%arg0: i32, %arg1: memref<16x64xbf16, #tpu.memory_space<vmem>>, %arg2: memref<64x128xbf16, #tpu.memory_space<vmem>>, %arg3: memref<1x128xf32, #tpu.memory_space<vmem>>, %arg4: memref<16x128xbf16, #tpu.memory_space<vmem>>) attributes {dimension_semantics = [#tpu.dimension_semantics<parallel>], iteration_bounds = array<i64: 1>, scalar_prefetch = 0 : i64, scratch_operands = 0 : i64, tpu.core_type = #tpu.core_type<tc>, window_params = [{transform_indices = @transform_0, window_bounds = array<i64: 16, 64>}, {pipeline_mode = #tpu.pipeline_mode<synchronous>, transform_indices = @transform_1, window_bounds = array<i64: 64, 128>}, {pipeline_mode = #tpu.pipeline_mode<synchronous>, transform_indices = @transform_2, window_bounds = array<i64: 1, 128>}, {transform_indices = @transform_3, window_bounds = array<i64: 16, 128>}]} {
    %c0 = arith.constant 0 : index
    %c0_0 = arith.constant 0 : index
    %0 = vector.load %arg1[%c0, %c0_0] : memref<16x64xbf16, #tpu.memory_space<vmem>>, vector<16x64xbf16>
    %c0_1 = arith.constant 0 : index
    %c0_2 = arith.constant 0 : index
    %1 = vector.load %arg2[%c0_1, %c0_2] : memref<64x128xbf16, #tpu.memory_space<vmem>>, vector<64x128xbf16>
    %cst = arith.constant dense<0.000000e+00> : vector<16x128xf32>
    %2 = tpu.matmul %0, %1, %cst {dimension_numbers = #tpu.dot_dimension_numbers<[1], [0], [0], [1], [0, 0, 1, 1], [], []>} : vector<16x64xbf16>, vector<64x128xbf16>, vector<16x128xf32> -> vector<16x128xf32>
    %c0_3 = arith.constant 0 : index
    %c0_4 = arith.constant 0 : index
    %3 = vector.load %arg3[%c0_3, %c0_4] : memref<1x128xf32, #tpu.memory_space<vmem>>, vector<1x128xf32>
    %4 = vector.broadcast %3 : vector<1x128xf32> to vector<16x128xf32>
    %5 = arith.addf %2, %4 : vector<16x128xf32>
    %cst_5 = arith.constant 0.000000e+00 : f32
    %6 = vector.broadcast %cst_5 : f32 to vector<16x128xf32>
    %7 = arith.maximumf %5, %6 : vector<16x128xf32>
    %8 = arith.truncf %7 : vector<16x128xf32> to vector<16x128xbf16>
    %c0_6 = arith.constant 0 : index
    %c0_7 = arith.constant 0 : index
    %9 = vector.load %arg4[%c0_6, %c0_7] : memref<16x128xbf16, #tpu.memory_space<vmem>>, vector<16x128xbf16>
    tpu.vector_store %arg4[%c0_6, %c0_7], %8 {strides = array<i32>} : memref<16x128xbf16, #tpu.memory_space<vmem>>, vector<16x128xbf16>,
    return
  }
  func.func @transform_0(%arg0: i32) -> (i32, i32) {
    %c0_i32 = arith.constant 0 : i32
    %c0_i32_0 = arith.constant 0 : i32
    return %arg0, %c0_i32 : i32, i32
  }
  func.func @transform_1(%arg0: i32) -> (i32, i32) {
    %c0_i32 = arith.constant 0 : i32
    %c0_i32_0 = arith.constant 0 : i32
    %c0_i32_1 = arith.constant 0 : i32
    return %c0_i32, %c0_i32_0 : i32, i32
  }
  func.func @transform_2(%arg0: i32) -> (i32, i32) {
    %c0_i32 = arith.constant 0 : i32
    %c0_i32_0 = arith.constant 0 : i32
    %c0_i32_1 = arith.constant 0 : i32
    return %c0_i32, %c0_i32_0 : i32, i32
  }
  func.func @transform_3(%arg0: i32) -> (i32, i32) {
    %c0_i32 = arith.constant 0 : i32
    %c0_i32_0 = arith.constant 0 : i32
    return %arg0, %c0_i32 : i32, i32
  }
}

module attributes {stable_mosaic.version = 11 : i64} {
  func.func @_fused_matmul_kernel(%arg0: i32, %arg1: memref<16x32xbf16, #tpu.memory_space<vmem>>, %arg2: memref<16x32xbf16, #tpu.memory_space<vmem>>, %arg3: memref<16x32xbf16, #tpu.memory_space<vmem>>, %arg4: memref<32x128xbf16, #tpu.memory_space<vmem>>, %arg5: memref<32x128xbf16, #tpu.memory_space<vmem>>, %arg6: memref<32x128xbf16, #tpu.memory_space<vmem>>, %arg7: memref<1x128xf32, #tpu.memory_space<vmem>>, %arg8: memref<16x128xbf16, #tpu.memory_space<vmem>>) attributes {dimension_semantics = [#tpu.dimension_semantics<parallel>], iteration_bounds = array<i64: 1>, scalar_prefetch = 0 : i64, scratch_operands = 0 : i64, tpu.core_type = #tpu.core_type<tc>, window_params = [{transform_indices = @transform_0, window_bounds = array<i64: 16, 32>}, {transform_indices = @transform_1, window_bounds = array<i64: 16, 32>}, {transform_indices = @transform_2, window_bounds = array<i64: 16, 32>}, {pipeline_mode = #tpu.pipeline_mode<synchronous>, transform_indices = @transform_3, window_bounds = array<i64: 32, 128>}, {pipeline_mode = #tpu.pipeline_mode<synchronous>, transform_indices = @transform_4, window_bounds = array<i64: 32, 128>}, {pipeline_mode = #tpu.pipeline_mode<synchronous>, transform_indices = @transform_5, window_bounds = array<i64: 32, 128>}, {pipeline_mode = #tpu.pipeline_mode<synchronous>, transform_indices = @transform_6, window_bounds = array<i64: 1, 128>}, {transform_indices = @transform_7, window_bounds = array<i64: 16, 128>}]} {
    %c0 = arith.constant 0 : index
    %c0_0 = arith.constant 0 : index
    %0 = vector.load %arg1[%c0, %c0_0] : memref<16x32xbf16, #tpu.memory_space<vmem>>, vector<16x32xbf16>
    %c0_1 = arith.constant 0 : index
    %c0_2 = arith.constant 0 : index
    %1 = vector.load %arg4[%c0_1, %c0_2] : memref<32x128xbf16, #tpu.memory_space<vmem>>, vector<32x128xbf16>
    %cst = arith.constant dense<0.000000e+00> : vector<16x128xf32>
    %2 = tpu.matmul %0, %1, %cst {dimension_numbers = #tpu.dot_dimension_numbers<[1], [0], [0], [1], [0, 0, 1, 1], [], []>} : vector<16x32xbf16>, vector<32x128xbf16>, vector<16x128xf32> -> vector<16x128xf32>
    %c0_3 = arith.constant 0 : index
    %c0_4 = arith.constant 0 : index
    %3 = vector.load %arg2[%c0_3, %c0_4] : memref<16x32xbf16, #tpu.memory_space<vmem>>, vector<16x32xbf16>
    %c0_5 = arith.constant 0 : index
    %c0_6 = arith.constant 0 : index
    %4 = vector.load %arg5[%c0_5, %c0_6] : memref<32x128xbf16, #tpu.memory_space<vmem>>, vector<32x128xbf16>
    %cst_7 = arith.constant dense<0.000000e+00> : vector<16x128xf32>
    %5 = tpu.matmul %3, %4, %cst_7 {dimension_numbers = #tpu.dot_dimension_numbers<[1], [0], [0], [1], [0, 0, 1, 1], [], []>} : vector<16x32xbf16>, vector<32x128xbf16>, vector<16x128xf32> -> vector<16x128xf32>
    %6 = arith.addf %2, %5 : vector<16x128xf32>
    %c0_8 = arith.constant 0 : index
    %c0_9 = arith.constant 0 : index
    %7 = vector.load %arg3[%c0_8, %c0_9] : memref<16x32xbf16, #tpu.memory_space<vmem>>, vector<16x32xbf16>
    %c0_10 = arith.constant 0 : index
    %c0_11 = arith.constant 0 : index
    %8 = vector.load %arg6[%c0_10, %c0_11] : memref<32x128xbf16, #tpu.memory_space<vmem>>, vector<32x128xbf16>
    %cst_12 = arith.constant dense<0.000000e+00> : vector<16x128xf32>
    %9 = tpu.matmul %7, %8, %cst_12 {dimension_numbers = #tpu.dot_dimension_numbers<[1], [0], [0], [1], [0, 0, 1, 1], [], []>} : vector<16x32xbf16>, vector<32x128xbf16>, vector<16x128xf32> -> vector<16x128xf32>
    %10 = arith.addf %6, %9 : vector<16x128xf32>
    %c0_13 = arith.constant 0 : index
    %c0_14 = arith.constant 0 : index
    %11 = vector.load %arg7[%c0_13, %c0_14] : memref<1x128xf32, #tpu.memory_space<vmem>>, vector<1x128xf32>
    %12 = vector.broadcast %11 : vector<1x128xf32> to vector<16x128xf32>
    %13 = arith.addf %10, %12 : vector<16x128xf32>
    %cst_15 = arith.constant 0.000000e+00 : f32
    %14 = vector.broadcast %cst_15 : f32 to vector<16x128xf32>
    %15 = arith.maximumf %13, %14 : vector<16x128xf32>
    %16 = arith.truncf %15 : vector<16x128xf32> to vector<16x128xbf16>
    %c0_16 = arith.constant 0 : index
    %c0_17 = arith.constant 0 : index
    %17 = vector.load %arg8[%c0_16, %c0_17] : memref<16x128xbf16, #tpu.memory_space<vmem>>, vector<16x128xbf16>
    tpu.vector_store %arg8[%c0_16, %c0_17], %16 {strides = array<i32>} : memref<16x128xbf16, #tpu.memory_space<vmem>>, vector<16x128xbf16>,
    return
  }
  func.func @transform_0(%arg0: i32) -> (i32, i32) {
    %c0_i32 = arith.constant 0 : i32
    %c0_i32_0 = arith.constant 0 : i32
    return %arg0, %c0_i32 : i32, i32
  }
  func.func @transform_1(%arg0: i32) -> (i32, i32) {
    %c0_i32 = arith.constant 0 : i32
    %c0_i32_0 = arith.constant 0 : i32
    return %arg0, %c0_i32 : i32, i32
  }
  func.func @transform_2(%arg0: i32) -> (i32, i32) {
    %c0_i32 = arith.constant 0 : i32
    %c0_i32_0 = arith.constant 0 : i32
    return %arg0, %c0_i32 : i32, i32
  }
  func.func @transform_3(%arg0: i32) -> (i32, i32) {
    %c0_i32 = arith.constant 0 : i32
    %c0_i32_0 = arith.constant 0 : i32
    %c0_i32_1 = arith.constant 0 : i32
    return %c0_i32, %c0_i32_0 : i32, i32
  }
  func.func @transform_4(%arg0: i32) -> (i32, i32) {
    %c0_i32 = arith.constant 0 : i32
    %c0_i32_0 = arith.constant 0 : i32
    %c0_i32_1 = arith.constant 0 : i32
    return %c0_i32, %c0_i32_0 : i32, i32
  }
  func.func @transform_5(%arg0: i32) -> (i32, i32) {
    %c0_i32 = arith.constant 0 : i32
    %c0_i32_0 = arith.constant 0 : i32
    %c0_i32_1 = arith.constant 0 : i32
    return %c0_i32, %c0_i32_0 : i32, i32
  }
  func.func @transform_6(%arg0: i32) -> (i32, i32) {
    %c0_i32 = arith.constant 0 : i32
    %c0_i32_0 = arith.constant 0 : i32
    %c0_i32_1 = arith.constant 0 : i32
    return %c0_i32, %c0_i32_0 : i32, i32
  }
  func.func @transform_7(%arg0: i32) -> (i32, i32) {
    %c0_i32 = arith.constant 0 : i32
    %c0_i32_0 = arith.constant 0 : i32
    return %arg0, %c0_i32 : i32, i32
  }
}

module attributes {stable_mosaic.version = 11 : i64} {
  func.func @_fused_matmul_kernel(%arg0: i32, %arg1: memref<64x288xbf16, #tpu.memory_space<vmem>>, %arg2: memref<64x144xbf16, #tpu.memory_space<vmem>>, %arg3: memref<288x128xbf16, #tpu.memory_space<vmem>>, %arg4: memref<144x128xbf16, #tpu.memory_space<vmem>>, %arg5: memref<1x128xf32, #tpu.memory_space<vmem>>, %arg6: memref<64x128xbf16, #tpu.memory_space<vmem>>) attributes {dimension_semantics = [#tpu.dimension_semantics<parallel>], iteration_bounds = array<i64: 1>, scalar_prefetch = 0 : i64, scratch_operands = 0 : i64, tpu.core_type = #tpu.core_type<tc>, window_params = [{transform_indices = @transform_0, window_bounds = array<i64: 64, 288>}, {transform_indices = @transform_1, window_bounds = array<i64: 64, 144>}, {pipeline_mode = #tpu.pipeline_mode<synchronous>, transform_indices = @transform_2, window_bounds = array<i64: 288, 128>}, {pipeline_mode = #tpu.pipeline_mode<synchronous>, transform_indices = @transform_3, window_bounds = array<i64: 144, 128>}, {pipeline_mode = #tpu.pipeline_mode<synchronous>, transform_indices = @transform_4, window_bounds = array<i64: 1, 128>}, {transform_indices = @transform_5, window_bounds = array<i64: 64, 128>}]} {
    %c0 = arith.constant 0 : index
    %c0_0 = arith.constant 0 : index
    %0 = vector.load %arg1[%c0, %c0_0] : memref<64x288xbf16, #tpu.memory_space<vmem>>, vector<64x288xbf16>
    %c0_1 = arith.constant 0 : index
    %c0_2 = arith.constant 0 : index
    %1 = vector.load %arg3[%c0_1, %c0_2] : memref<288x128xbf16, #tpu.memory_space<vmem>>, vector<288x128xbf16>
    %cst = arith.constant dense<0.000000e+00> : vector<64x128xf32>
    %2 = tpu.matmul %0, %1, %cst {dimension_numbers = #tpu.dot_dimension_numbers<[1], [0], [0], [1], [0, 0, 1, 1], [], []>} : vector<64x288xbf16>, vector<288x128xbf16>, vector<64x128xf32> -> vector<64x128xf32>
    %c0_3 = arith.constant 0 : index
    %c0_4 = arith.constant 0 : index
    %3 = vector.load %arg2[%c0_3, %c0_4] : memref<64x144xbf16, #tpu.memory_space<vmem>>, vector<64x144xbf16>
    %c0_5 = arith.constant 0 : index
    %c0_6 = arith.constant 0 : index
    %4 = vector.load %arg4[%c0_5, %c0_6] : memref<144x128xbf16, #tpu.memory_space<vmem>>, vector<144x128xbf16>
    %cst_7 = arith.constant dense<0.000000e+00> : vector<64x128xf32>
    %5 = tpu.matmul %3, %4, %cst_7 {dimension_numbers = #tpu.dot_dimension_numbers<[1], [0], [0], [1], [0, 0, 1, 1], [], []>} : vector<64x144xbf16>, vector<144x128xbf16>, vector<64x128xf32> -> vector<64x128xf32>
    %6 = arith.addf %2, %5 : vector<64x128xf32>
    %c0_8 = arith.constant 0 : index
    %c0_9 = arith.constant 0 : index
    %7 = vector.load %arg5[%c0_8, %c0_9] : memref<1x128xf32, #tpu.memory_space<vmem>>, vector<1x128xf32>
    %8 = vector.broadcast %7 : vector<1x128xf32> to vector<64x128xf32>
    %9 = arith.addf %6, %8 : vector<64x128xf32>
    %cst_10 = arith.constant 0.000000e+00 : f32
    %10 = vector.broadcast %cst_10 : f32 to vector<64x128xf32>
    %11 = arith.maximumf %9, %10 : vector<64x128xf32>
    %12 = arith.truncf %11 : vector<64x128xf32> to vector<64x128xbf16>
    %c0_11 = arith.constant 0 : index
    %c0_12 = arith.constant 0 : index
    %13 = vector.load %arg6[%c0_11, %c0_12] : memref<64x128xbf16, #tpu.memory_space<vmem>>, vector<64x128xbf16>
    tpu.vector_store %arg6[%c0_11, %c0_12], %12 {strides = array<i32>} : memref<64x128xbf16, #tpu.memory_space<vmem>>, vector<64x128xbf16>,
    return
  }
  func.func @transform_0(%arg0: i32) -> (i32, i32) {
    %c0_i32 = arith.constant 0 : i32
    %c0_i32_0 = arith.constant 0 : i32
    return %arg0, %c0_i32 : i32, i32
  }
  func.func @transform_1(%arg0: i32) -> (i32, i32) {
    %c0_i32 = arith.constant 0 : i32
    %c0_i32_0 = arith.constant 0 : i32
    return %arg0, %c0_i32 : i32, i32
  }
  func.func @transform_2(%arg0: i32) -> (i32, i32) {
    %c0_i32 = arith.constant 0 : i32
    %c0_i32_0 = arith.constant 0 : i32
    %c0_i32_1 = arith.constant 0 : i32
    return %c0_i32, %c0_i32_0 : i32, i32
  }
  func.func @transform_3(%arg0: i32) -> (i32, i32) {
    %c0_i32 = arith.constant 0 : i32
    %c0_i32_0 = arith.constant 0 : i32
    %c0_i32_1 = arith.constant 0 : i32
    return %c0_i32, %c0_i32_0 : i32, i32
  }
  func.func @transform_4(%arg0: i32) -> (i32, i32) {
    %c0_i32 = arith.constant 0 : i32
    %c0_i32_0 = arith.constant 0 : i32
    %c0_i32_1 = arith.constant 0 : i32
    return %c0_i32, %c0_i32_0 : i32, i32
  }
  func.func @transform_5(%arg0: i32) -> (i32, i32) {
    %c0_i32 = arith.constant 0 : i32
    %c0_i32_0 = arith.constant 0 : i32
    return %arg0, %c0_i32 : i32, i32
  }
}

module attributes {stable_mosaic.version = 11 : i64} {
  func.func @_fused_matmul_kernel(%arg0: i32, %arg1: memref<64x32xbf16, #tpu.memory_space<vmem>>, %arg2: memref<32x128xbf16, #tpu.memory_space<vmem>>, %arg3: memref<1x128xf32, #tpu.memory_space<vmem>>, %arg4: memref<64x128xf32, #tpu.memory_space<vmem>>) attributes {dimension_semantics = [#tpu.dimension_semantics<parallel>], iteration_bounds = array<i64: 1>, scalar_prefetch = 0 : i64, scratch_operands = 0 : i64, tpu.core_type = #tpu.core_type<tc>, window_params = [{transform_indices = @transform_0, window_bounds = array<i64: 64, 32>}, {pipeline_mode = #tpu.pipeline_mode<synchronous>, transform_indices = @transform_1, window_bounds = array<i64: 32, 128>}, {pipeline_mode = #tpu.pipeline_mode<synchronous>, transform_indices = @transform_2, window_bounds = array<i64: 1, 128>}, {transform_indices = @transform_3, window_bounds = array<i64: 64, 128>}]} {
    %c0 = arith.constant 0 : index
    %c0_0 = arith.constant 0 : index
    %0 = vector.load %arg1[%c0, %c0_0] : memref<64x32xbf16, #tpu.memory_space<vmem>>, vector<64x32xbf16>
    %c0_1 = arith.constant 0 : index
    %c0_2 = arith.constant 0 : index
    %1 = vector.load %arg2[%c0_1, %c0_2] : memref<32x128xbf16, #tpu.memory_space<vmem>>, vector<32x128xbf16>
    %cst = arith.constant dense<0.000000e+00> : vector<64x128xf32>
    %2 = tpu.matmul %0, %1, %cst {dimension_numbers = #tpu.dot_dimension_numbers<[1], [0], [0], [1], [0, 0, 1, 1], [], []>} : vector<64x32xbf16>, vector<32x128xbf16>, vector<64x128xf32> -> vector<64x128xf32>
    %c0_3 = arith.constant 0 : index
    %c0_4 = arith.constant 0 : index
    %3 = vector.load %arg3[%c0_3, %c0_4] : memref<1x128xf32, #tpu.memory_space<vmem>>, vector<1x128xf32>
    %4 = vector.broadcast %3 : vector<1x128xf32> to vector<64x128xf32>
    %5 = arith.addf %2, %4 : vector<64x128xf32>
    %6 = arith.negf %5 : vector<64x128xf32>
    %7 = math.exp %6 : vector<64x128xf32>
    %cst_5 = arith.constant 1.000000e+00 : f32
    %8 = vector.broadcast %cst_5 : f32 to vector<64x128xf32>
    %9 = arith.addf %8, %7 : vector<64x128xf32>
    %10 = arith.divf %8, %9 : vector<64x128xf32>
    %c0_6 = arith.constant 0 : index
    %c0_7 = arith.constant 0 : index
    %11 = vector.load %arg4[%c0_6, %c0_7] : memref<64x128xf32, #tpu.memory_space<vmem>>, vector<64x128xf32>
    tpu.vector_store %arg4[%c0_6, %c0_7], %10 {strides = array<i32>} : memref<64x128xf32, #tpu.memory_space<vmem>>, vector<64x128xf32>,
    return
  }
  func.func @transform_0(%arg0: i32) -> (i32, i32) {
    %c0_i32 = arith.constant 0 : i32
    %c0_i32_0 = arith.constant 0 : i32
    return %arg0, %c0_i32 : i32, i32
  }
  func.func @transform_1(%arg0: i32) -> (i32, i32) {
    %c0_i32 = arith.constant 0 : i32
    %c0_i32_0 = arith.constant 0 : i32
    %c0_i32_1 = arith.constant 0 : i32
    return %c0_i32, %c0_i32_0 : i32, i32
  }
  func.func @transform_2(%arg0: i32) -> (i32, i32) {
    %c0_i32 = arith.constant 0 : i32
    %c0_i32_0 = arith.constant 0 : i32
    %c0_i32_1 = arith.constant 0 : i32
    return %c0_i32, %c0_i32_0 : i32, i32
  }
  func.func @transform_3(%arg0: i32) -> (i32, i32) {
    %c0_i32 = arith.constant 0 : i32
    %c0_i32_0 = arith.constant 0 : i32
    return %arg0, %c0_i32 : i32, i32
  }
}

</mosaic_0001>

<bundles_post_ra>
// kernel: segmentation_forward.10
= control target key start
LH: loop header
LB: loop body
LE: loop exit
PB: predicated region body
PF: predicated region fallthrough
CT: control target
= control target key end

     0   :  { %vm190_vm0 = vcmask 1043456   ;;  %vm191_vm1 = vcmask 1044480   ;;  %vm141_vm2 = vcmask 72704   ;;  %v818_v1 = vmov 65535   ;;  %s991_s1 = inlined_call_operand.vmem [shape: bf16[9,128], index: 1, kind: input, shape index: {}]   ;;  %s992_s0 = inlined_call_operand.vmem [shape: bf16[256,9], index: 0, kind: input, shape index: {}]   ;;  %s993_s2 = inlined_call_operand.vmem [shape: f32[1,128], index: 2, kind: input, shape index: {}]   ;;  %s994_s3 = inlined_call_operand.vmem [shape: bf16[256,128], index: 3, kind: output, shape index: {}]  }
   0x1   :  { %v801_v0 = vld [vmem:[%s991_s1] sm:$0x1f]   ;;  %v192_v2 = vsel %vm190_vm0, 4294967295, %v818_v1  ;;  %v804_v7 = vld [vmem:[%s992_s0 + $0x8] sm:$0xff]   ;;  %v806_v9 = vld [vmem:[%s992_s0 + $0x10] sm:$0xff]  }
   0x2   :  { %v802_v3 = vld [vmem:[%s992_s0] sm:$0xff]   ;;  %v193_v4 = vsel %vm191_vm1, %v192_v2, 0  ;;  %v805_v8 = vld [vmem:[%s992_s0 + $0x48] sm:$0xff]   ;;  %v807_v10 = vld [vmem:[%s992_s0 + $0x50] sm:$0xff]  }
   0x3   :  { %v803_v5 = vld [vmem:[%s992_s0 + $0x40] sm:$0xff]   ;;  %v195_v6 = vand.u32 %v801_v0, %v193_v4  ;;  %766 = vmatprep.mubr.msk.bf16.mxu0 %vm141_vm2, %v802_v3  ;;  %v808_v11 = vld [vmem:[%s992_s0 + $0x18] sm:$0xff]   ;;  %v812_v15 = vld [vmem:[%s992_s0 + $0x28] sm:$0xff]  }
   0x4   :  { %782 = vmatprep.mubr.msk.bf16.mxu1 %vm141_vm2, %v803_v5  ;;  %v809_v12 = vld [vmem:[%s992_s0 + $0x58] sm:$0xff]   ;;  %v810_v13 = vld [vmem:[%s992_s0 + $0x20] sm:$0xff]   ;;  %v813_v16 = vld [vmem:[%s992_s0 + $0x68] sm:$0xff]  }
   0x5   :  { %764 = vmatprep.subr.bf16.mxu0 %v195_v6  ;;  %798 = vmatprep.subr.bf16.mxu1 %v195_v6  ;;  %v811_v14 = vld [vmem:[%s992_s0 + $0x60] sm:$0xff]   ;;  %v814_v17 = vld [vmem:[%s992_s0 + $0x30] sm:$0xff]   ;;  %v816_v19 = vld [vmem:[%s992_s0 + $0x38] sm:$0xff]  }
   0x6   :  { %765 = vmatpush3.bf16.msra.mxu0 %v195_v6  ;;  %799 = vmatpush3.bf16.msra.mxu1 %v195_v6  ;;  %v815_v18 = vld [vmem:[%s992_s0 + $0x70] sm:$0xff]   ;;  %v817_v20 = vld [vmem:[%s992_s0 + $0x78] sm:$0xff]   ;;  %v909_v21 = vld [vmem:[%s993_s2] ss:$0 sm:$0xff] }
   0x9   :  { %767 = vmatmul.mubr.msk.bf16.vlgmr.msra.gmra.mrb[0].mxu0 %vm141_vm2, %v804_v7  ;;  %783 = vmatmul.mubr.msk.bf16.vlgmr.msra.gmra.mrb[0].mxu1 %vm141_vm2, %v805_v8 }
   0xa   :  { %770 = vmatprep.mubr.msk.bf16.mxu0 %vm141_vm2, %v806_v9  ;;  %786 = vmatprep.mubr.msk.bf16.mxu1 %vm141_vm2, %v807_v10 }
  0x11   :  { %771 = vmatmul.mubr.msk.bf16.gmra.mrb[4].mxu0 %vm141_vm2, %v808_v11  ;;  %787 = vmatmul.mubr.msk.bf16.gmra.mrb[4].mxu1 %vm141_vm2, %v809_v12 }
  0x12   :  { %774 = vmatprep.mubr.msk.bf16.mxu0 %vm141_vm2, %v810_v13  ;;  %790 = vmatprep.mubr.msk.bf16.mxu1 %vm141_vm2, %v811_v14 }
  0x19   :  { %775 = vmatmul.mubr.msk.bf16.gmra.mrb[8].mxu0 %vm141_vm2, %v812_v15  ;;  %791 = vmatmul.mubr.msk.bf16.gmra.mrb[8].mxu1 %vm141_vm2, %v813_v16 }
  0x1a   :  { %778 = vmatprep.mubr.msk.bf16.mxu0 %vm141_vm2, %v814_v17  ;;  %794 = vmatprep.mubr.msk.bf16.mxu1 %vm141_vm2, %v815_v18 }
  0x21   :  { %779 = vmatmul.mubr.msk.bf16.gmra.mrb[12].mxu0 %vm141_vm2, %v816_v19  ;;  %795 = vmatmul.mubr.msk.bf16.gmra.mrb[12].mxu1 %vm141_vm2, %v817_v20 }
  0xdc   :  { %v768_v22 = vpop.f32.mrb[0].mxu0  ;;  %v784_v23 = vpop.f32.mrb[0].mxu1 }
  0xdd   :  { %v240_v24 = vadd.f32 %v768_v22, %v909_v21  ;;  %v304_v25 = vadd.f32 %v784_v23, %v909_v21  ;;  %v231_v26 = vpop.f32.mrb[1].mxu0  ;;  %v295_v27 = vpop.f32.mrb[1].mxu1 }
  0xde   :  { %v232_v28 = vadd.f32 %v909_v21, %v231_v26  ;;  %v296_v29 = vadd.f32 %v909_v21, %v295_v27  ;;  %v769_v30 = vpop.f32.mrb[2].mxu0  ;;  %v785_v31 = vpop.f32.mrb[2].mxu1 }
  0xdf   :  { %v243_v32 = vadd.f32 %v769_v30, %v909_v21  ;;  %v307_v33 = vadd.f32 %v785_v31, %v909_v21  ;;  %v234_v34 = vpop.f32.mrb[3].mxu0  ;;  %v298_v35 = vpop.f32.mrb[3].mxu1  ;;  %v360_v38 = vmax.f32 %v240_v24, 0.0  ;;  %v376_v39 = vmax.f32 %v304_v25, 0.0 }
  0xe0   :  { %v235_v36 = vadd.f32 %v909_v21, %v234_v34  ;;  %v299_v37 = vadd.f32 %v909_v21, %v298_v35  ;;  %v358_v42 = vmax.f32 %v232_v28, 0.0  ;;  %v374_v43 = vmax.f32 %v296_v29, 0.0 }
  0xe1   :  { %v361_v40 = vmax.f32 %v243_v32, 0.0  ;;  %v377_v41 = vmax.f32 %v307_v33, 0.0 }
  0xe2   :  { %v359_v44 = vmax.f32 %v235_v36, 0.0  ;;  %v375_v45 = vmax.f32 %v299_v37, 0.0 }
  0xe3   :  { %v660_v46 = vpack.c.bf16 %v361_v40, %v360_v38  ;;  %v700_v47 = vpack.c.bf16 %v377_v41, %v376_v39 }
  0xe4   :  { %v655_v48 = vpack.c.bf16 %v359_v44, %v358_v42  ;;  %v695_v49 = vpack.c.bf16 %v375_v45, %v374_v43  ;;  %v772_v50 = vpop.f32.mrb[4].mxu0  ;;  %v788_v51 = vpop.f32.mrb[4].mxu1 }
  0xe5   :  { %732 = vst [vmem:[%s994_s3 + $0x8] sm:$0xff] %v660_v46   ;;  %740 = vst [vmem:[%s994_s3 + $0x48] sm:$0xff] %v700_v47   ;;  %v256_v52 = vadd.f32 %v772_v50, %v909_v21  ;;  %v320_v53 = vadd.f32 %v788_v51, %v909_v21  ;;  %v247_v54 = vpop.f32.mrb[5].mxu0  ;;  %v311_v55 = vpop.f32.mrb[5].mxu1 }
  0xe6   :  { %656 = vst [vmem:[%s994_s3] sm:$0xff] %v655_v48   ;;  %739 = vst [vmem:[%s994_s3 + $0x40] sm:$0xff] %v695_v49   ;;  %v248_v56 = vadd.f32 %v909_v21, %v247_v54  ;;  %v312_v57 = vadd.f32 %v909_v21, %v311_v55  ;;  %v773_v58 = vpop.f32.mrb[6].mxu0  ;;  %v789_v59 = vpop.f32.mrb[6].mxu1 }
  0xe7   :  { %v259_v60 = vadd.f32 %v773_v58, %v909_v21  ;;  %v323_v61 = vadd.f32 %v789_v59, %v909_v21  ;;  %v250_v62 = vpop.f32.mrb[7].mxu0  ;;  %v314_v63 = vpop.f32.mrb[7].mxu1  ;;  %v364_v2 = vmax.f32 %v256_v52, 0.0  ;;  %v380_v3 = vmax.f32 %v320_v53, 0.0 }
  0xe8   :  { %v251_v0 = vadd.f32 %v909_v21, %v250_v62  ;;  %v315_v1 = vadd.f32 %v909_v21, %v314_v63  ;;  %v362_v6 = vmax.f32 %v248_v56, 0.0  ;;  %v378_v7 = vmax.f32 %v312_v57, 0.0 }
  0xe9   :  { %v365_v4 = vmax.f32 %v259_v60, 0.0  ;;  %v381_v5 = vmax.f32 %v323_v61, 0.0 }
  0xea   :  { %v363_v8 = vmax.f32 %v251_v0, 0.0  ;;  %v379_v9 = vmax.f32 %v315_v1, 0.0 }
  0xeb   :  { %v670_v10 = vpack.c.bf16 %v365_v4, %v364_v2  ;;  %v710_v11 = vpack.c.bf16 %v381_v5, %v380_v3 }
  0xec   :  { %v665_v12 = vpack.c.bf16 %v363_v8, %v362_v6  ;;  %v705_v13 = vpack.c.bf16 %v379_v9, %v378_v7  ;;  %v776_v14 = vpop.f32.mrb[8].mxu0  ;;  %v792_v15 = vpop.f32.mrb[8].mxu1 }
  0xed   :  { %734 = vst [vmem:[%s994_s3 + $0x18] sm:$0xff] %v670_v10   ;;  %742 = vst [vmem:[%s994_s3 + $0x58] sm:$0xff] %v710_v11   ;;  %v272_v16 = vadd.f32 %v776_v14, %v909_v21  ;;  %v336_v17 = vadd.f32 %v792_v15, %v909_v21  ;;  %v263_v18 = vpop.f32.mrb[9].mxu0  ;;  %v327_v19 = vpop.f32.mrb[9].mxu1 }
  0xee   :  { %733 = vst [vmem:[%s994_s3 + $0x10] sm:$0xff] %v665_v12   ;;  %741 = vst [vmem:[%s994_s3 + $0x50] sm:$0xff] %v705_v13   ;;  %v264_v20 = vadd.f32 %v909_v21, %v263_v18  ;;  %v328_v22 = vadd.f32 %v909_v21, %v327_v19  ;;  %v777_v23 = vpop.f32.mrb[10].mxu0  ;;  %v793_v24 = vpop.f32.mrb[10].mxu1 }
  0xef   :  { %v275_v25 = vadd.f32 %v777_v23, %v909_v21  ;;  %v339_v26 = vadd.f32 %v793_v24, %v909_v21  ;;  %v266_v27 = vpop.f32.mrb[11].mxu0  ;;  %v330_v28 = vpop.f32.mrb[11].mxu1  ;;  %v368_v31 = vmax.f32 %v272_v16, 0.0  ;;  %v384_v32 = vmax.f32 %v336_v17, 0.0 }
  0xf0   :  { %v267_v29 = vadd.f32 %v909_v21, %v266_v27  ;;  %v331_v30 = vadd.f32 %v909_v21, %v330_v28  ;;  %v366_v35 = vmax.f32 %v264_v20, 0.0  ;;  %v382_v36 = vmax.f32 %v328_v22, 0.0 }
  0xf1   :  { %v369_v33 = vmax.f32 %v275_v25, 0.0  ;;  %v385_v34 = vmax.f32 %v339_v26, 0.0 }
  0xf2   :  { %v367_v37 = vmax.f32 %v267_v29, 0.0  ;;  %v383_v38 = vmax.f32 %v331_v30, 0.0 }
  0xf3   :  { %v680_v39 = vpack.c.bf16 %v369_v33, %v368_v31  ;;  %v720_v40 = vpack.c.bf16 %v385_v34, %v384_v32 }
  0xf4   :  { %v675_v41 = vpack.c.bf16 %v367_v37, %v366_v35  ;;  %v715_v42 = vpack.c.bf16 %v383_v38, %v382_v36  ;;  %v780_v43 = vpop.f32.mrb[12].mxu0  ;;  %v796_v44 = vpop.f32.mrb[12].mxu1 }
  0xf5   :  { %736 = vst [vmem:[%s994_s3 + $0x28] sm:$0xff] %v680_v39   ;;  %744 = vst [vmem:[%s994_s3 + $0x68] sm:$0xff] %v720_v40   ;;  %v288_v45 = vadd.f32 %v780_v43, %v909_v21  ;;  %v352_v46 = vadd.f32 %v796_v44, %v909_v21  ;;  %v279_v47 = vpop.f32.mrb[13].mxu0  ;;  %v343_v48 = vpop.f32.mrb[13].mxu1 }
  0xf6   :  { %735 = vst [vmem:[%s994_s3 + $0x20] sm:$0xff] %v675_v41   ;;  %743 = vst [vmem:[%s994_s3 + $0x60] sm:$0xff] %v715_v42   ;;  %v280_v49 = vadd.f32 %v909_v21, %v279_v47  ;;  %v344_v50 = vadd.f32 %v909_v21, %v343_v48  ;;  %v781_v51 = vpop.f32.mrb[14].mxu0  ;;  %v797_v52 = vpop.f32.mrb[14].mxu1 }
  0xf7   :  { %v291_v53 = vadd.f32 %v781_v51, %v909_v21  ;;  %v355_v54 = vadd.f32 %v797_v52, %v909_v21  ;;  %v282_v55 = vpop.f32.mrb[15].mxu0  ;;  %v346_v56 = vpop.f32.mrb[15].mxu1  ;;  %v372_v59 = vmax.f32 %v288_v45, 0.0  ;;  %v388_v60 = vmax.f32 %v352_v46, 0.0 }
  0xf8   :  { %v283_v57 = vadd.f32 %v909_v21, %v282_v55  ;;  %v347_v58 = vadd.f32 %v909_v21, %v346_v56  ;;  %v370_v63 = vmax.f32 %v280_v49, 0.0  ;;  %v386_v0 = vmax.f32 %v344_v50, 0.0 }
  0xf9   :  { %v373_v61 = vmax.f32 %v291_v53, 0.0  ;;  %v389_v62 = vmax.f32 %v355_v54, 0.0 }
  0xfa   :  { %v371_v1 = vmax.f32 %v283_v57, 0.0  ;;  %v387_v2 = vmax.f32 %v347_v58, 0.0 }
  0xfb   :  { %v690_v3 = vpack.c.bf16 %v373_v61, %v372_v59  ;;  %v730_v4 = vpack.c.bf16 %v389_v62, %v388_v60 }
  0xfc   :  { %v685_v5 = vpack.c.bf16 %v371_v1, %v370_v63  ;;  %v725_v6 = vpack.c.bf16 %v387_v2, %v386_v0 }
  0xfd   :  { %738 = vst [vmem:[%s994_s3 + $0x38] sm:$0xff] %v690_v3   ;;  %746 = vst [vmem:[%s994_s3 + $0x78] sm:$0xff] %v730_v4  }
  0xfe   :  { %737 = vst [vmem:[%s994_s3 + $0x30] sm:$0xff] %v685_v5   ;;  %745 = vst [vmem:[%s994_s3 + $0x70] sm:$0xff] %v725_v6  }

// kernel: segmentation_forward.11
= control target key start
LH: loop header
LB: loop body
LE: loop exit
PB: predicated region body
PF: predicated region fallthrough
CT: control target
= control target key end

     0   :  { %v369_v0 = vmov 0   ;;  %vm138_vm0 = vcmask 130048   ;;  %s460_s1 = inlined_call_operand.vmem [shape: bf16[144,128], index: 1, kind: input, shape index: {}]   ;;  %s461_s0 = inlined_call_operand.vmem [shape: bf16[64,144], index: 0, kind: input, shape index: {}]   ;;  %s462_s2 = inlined_call_operand.vmem [shape: f32[1,128], index: 2, kind: input, shape index: {}]   ;;  %s463_s3 = inlined_call_operand.vmem [shape: bf16[64,128], index: 3, kind: output, shape index: {}]  }
   0x1   :  { %151 = vmatprep.subr.bf16.mxu0 %v369_v0  ;;  %329 = vmatprep.subr.bf16.mxu1 %v369_v0  ;;  %v348_v1 = vld [vmem:[%s460_s1] sm:$0xff]   ;;  %v349_v2 = vld [vmem:[%s460_s1 + $0x8] sm:$0xff]   ;;  %v350_v3 = vld [vmem:[%s460_s1 + $0x10] sm:$0xff]  }
   0x2   :  { %152 = vmatpush1.bf16.msra.mxu0 %v348_v1  ;;  %338 = vmatpush1.bf16.msra.mxu1 %v348_v1  ;;  %v351_v4 = vld [vmem:[%s460_s1 + $0x18] sm:$0xff]   ;;  %v359_v5 = vld [vmem:[%s461_s0 + $0x4] ss:$8 sps:$4 sm:$0xff]   ;;  %v354_v9 = vld [vmem:[%s460_s1 + $0x30] sm:$0xff]  }
   0x3   :  { %153 = vmatprep.subr.bf16.mxu0 %v369_v0  ;;  %330 = vmatprep.subr.bf16.mxu1 %v369_v0  ;;  %v362_v6 = vld [vmem:[%s461_s0 + $0x24] ss:$8 sps:$4 sm:$0xff]   ;;  %v355_v10 = vld [vmem:[%s460_s1 + $0x38] sm:$0xff]   ;;  %v357_v12 = vld [vmem:[%s461_s0] ss:$8 sps:$4 sm:$0xff]  }
   0x4   :  { %286 = vmatprep.mubr.msk.bf16.mxu0 %vm138_vm0, %v359_v5  ;;  %288 = vmatprep.mubr.msk.bf16.mxu1 %vm138_vm0, %v362_v6  ;;  %v352_v7 = vld [vmem:[%s460_s1 + $0x20] sm:$0xff]   ;;  %v353_v8 = vld [vmem:[%s460_s1 + $0x28] sm:$0xff]   ;;  %v363_v14 = vld [vmem:[%s461_s0 + $0x14] ss:$8 sps:$4 sm:$0xff]  }
   0x5   :  { %v356_v11 = vld [vmem:[%s460_s1 + $0x40] sm:$0xff]   ;;  %v365_v15 = vld [vmem:[%s461_s0 + $0x34] ss:$8 sps:$4 sm:$0xff]   ;;  %v367_v16 = vld [vmem:[%s461_s0 + $0x10] ss:$8 sps:$4 sm:$0xff]  }
   0x6   :  { %154 = vmatpush1.bf16.msra.mxu0 %v349_v2  ;;  %339 = vmatpush1.bf16.msra.mxu1 %v349_v2  ;;  %v360_v13 = vld [vmem:[%s461_s0 + $0x20] ss:$8 sps:$4 sm:$0xff]   ;;  %v368_v17 = vld [vmem:[%s461_s0 + $0x30] ss:$8 sps:$4 sm:$0xff]  }
   0x7   :  { %155 = vmatprep.subr.bf16.mxu0 %v369_v0  ;;  %331 = vmatprep.subr.bf16.mxu1 %v369_v0  ;;  %v268_v18 = vld [vmem:[%s462_s2] ss:$0 sm:$0xff] }
   0xa   :  { %156 = vmatpush1.bf16.msra.mxu0 %v350_v3  ;;  %340 = vmatpush1.bf16.msra.mxu1 %v350_v3 }
   0xb   :  { %157 = vmatprep.subr.bf16.mxu0 %v369_v0  ;;  %332 = vmatprep.subr.bf16.mxu1 %v369_v0 }
   0xe   :  { %158 = vmatpush1.bf16.msra.mxu0 %v351_v4  ;;  %341 = vmatpush1.bf16.msra.mxu1 %v351_v4 }
   0xf   :  { %159 = vmatprep.subr.bf16.mxu0 %v369_v0  ;;  %333 = vmatprep.subr.bf16.mxu1 %v369_v0 }
  0x12   :  { %160 = vmatpush1.bf16.msra.mxu0 %v352_v7  ;;  %342 = vmatpush1.bf16.msra.mxu1 %v352_v7 }
  0x13   :  { %161 = vmatprep.subr.bf16.mxu0 %v369_v0  ;;  %334 = vmatprep.subr.bf16.mxu1 %v369_v0 }
  0x16   :  { %162 = vmatpush1.bf16.msra.mxu0 %v353_v8  ;;  %343 = vmatpush1.bf16.msra.mxu1 %v353_v8 }
  0x17   :  { %163 = vmatprep.subr.bf16.mxu0 %v369_v0  ;;  %335 = vmatprep.subr.bf16.mxu1 %v369_v0 }
  0x1a   :  { %164 = vmatpush1.bf16.msra.mxu0 %v354_v9  ;;  %344 = vmatpush1.bf16.msra.mxu1 %v354_v9 }
  0x1b   :  { %165 = vmatprep.subr.bf16.mxu0 %v369_v0  ;;  %336 = vmatprep.subr.bf16.mxu1 %v369_v0 }
  0x1e   :  { %166 = vmatpush1.bf16.msra.mxu0 %v355_v10  ;;  %345 = vmatpush1.bf16.msra.mxu1 %v355_v10 }
  0x1f   :  { %167 = vmatprep.subr.bf16.mxu0 %v369_v0  ;;  %337 = vmatprep.subr.bf16.mxu1 %v369_v0 }
  0x22   :  { %168 = vmatpush1.bf16.msra.mxu0 %v356_v11  ;;  %346 = vmatpush1.bf16.msra.mxu1 %v356_v11 }
  0x25   :  { %184 = vmatmul.mubr.bf16.vlgmr.msra.gmra.mrb[0].mxu0 %v357_v12  ;;  %200 = vmatmul.mubr.bf16.vlgmr.msra.gmra.mrb[0].mxu1 %v360_v13 }
  0x26   :  { %287 = vmatprep.mubr.msk.bf16.mxu0 %vm138_vm0, %v363_v14  ;;  %289 = vmatprep.mubr.msk.bf16.mxu1 %vm138_vm0, %v365_v15 }
  0x2d   :  { %192 = vmatmul.mubr.bf16.gmra.mrb[4].mxu0 %v367_v16  ;;  %208 = vmatmul.mubr.bf16.gmra.mrb[4].mxu1 %v368_v17 }
  0xf8   :  { %v185_v19 = vpop.f32.mrb[0].mxu0  ;;  %v201_v20 = vpop.f32.mrb[0].mxu1 }
  0xf9   :  { %v186_v21 = vadd.f32 %v268_v18, %v185_v19  ;;  %v202_v22 = vadd.f32 %v268_v18, %v201_v20  ;;  %v187_v23 = vpop.f32.mrb[1].mxu0  ;;  %v203_v24 = vpop.f32.mrb[1].mxu1 }
  0xfa   :  { %v188_v25 = vpop.f32.mrb[2].mxu0  ;;  %v204_v26 = vpop.f32.mrb[2].mxu1 }
  0xfb   :  { %v189_v27 = vadd.f32 %v268_v18, %v188_v25  ;;  %v205_v28 = vadd.f32 %v268_v18, %v204_v26  ;;  %v190_v29 = vpop.f32.mrb[3].mxu0  ;;  %v206_v30 = vpop.f32.mrb[3].mxu1  ;;  %v216_v31 = vmax.f32 %v186_v21, 0.0  ;;  %v220_v32 = vmax.f32 %v202_v22, 0.0 }
  0xfd   :  { %v217_v33 = vmax.f32 %v189_v27, 0.0  ;;  %v221_v34 = vmax.f32 %v205_v28, 0.0 }
  0xff   :  { %v309_v35 = vpack.c.bf16 %v217_v33, %v216_v31  ;;  %v319_v36 = vpack.c.bf16 %v221_v34, %v220_v32 }
 0x100   :  { %v193_v37 = vpop.f32.mrb[4].mxu0  ;;  %v209_v38 = vpop.f32.mrb[4].mxu1 }
 0x101   :  { %310 = vst [vmem:[%s463_s3] sm:$0xff] %v309_v35   ;;  %327 = vst [vmem:[%s463_s3 + $0x10] sm:$0xff] %v319_v36   ;;  %v194_v39 = vadd.f32 %v268_v18, %v193_v37  ;;  %v210_v40 = vadd.f32 %v268_v18, %v209_v38  ;;  %v195_v41 = vpop.f32.mrb[5].mxu0  ;;  %v211_v42 = vpop.f32.mrb[5].mxu1 }
 0x102   :  { %v196_v43 = vpop.f32.mrb[6].mxu0  ;;  %v212_v44 = vpop.f32.mrb[6].mxu1 }
 0x103   :  { %v197_v45 = vadd.f32 %v268_v18, %v196_v43  ;;  %v213_v46 = vadd.f32 %v268_v18, %v212_v44  ;;  %v198_v47 = vpop.f32.mrb[7].mxu0  ;;  %v214_v48 = vpop.f32.mrb[7].mxu1  ;;  %v218_v49 = vmax.f32 %v194_v39, 0.0  ;;  %v222_v50 = vmax.f32 %v210_v40, 0.0 }
 0x105   :  { %v219_v51 = vmax.f32 %v197_v45, 0.0  ;;  %v223_v52 = vmax.f32 %v213_v46, 0.0 }
 0x107   :  { %v314_v53 = vpack.c.bf16 %v219_v51, %v218_v49  ;;  %v324_v54 = vpack.c.bf16 %v223_v52, %v222_v50 }
 0x109   :  { %326 = vst [vmem:[%s463_s3 + $0x8] sm:$0xff] %v314_v53   ;;  %328 = vst [vmem:[%s463_s3 + $0x18] sm:$0xff] %v324_v54  }

// kernel: segmentation_forward.17
= control target key start
LH: loop header
LB: loop body
LE: loop exit
PB: predicated region body
PF: predicated region fallthrough
CT: control target
= control target key end

     0   :  { %vm66_vm0 = vcmask 261120   ;;  %s327_s1 = inlined_call_operand.vmem [shape: bf16[32,128], index: 1, kind: input, shape index: {}]   ;;  %s328_s0 = inlined_call_operand.vmem [shape: bf16[64,32], index: 0, kind: input, shape index: {}]   ;;  %s329_s2 = inlined_call_operand.vmem [shape: f32[1,128], index: 2, kind: input, shape index: {}]   ;;  %s330_s3 = inlined_call_operand.vmem [shape: bf16[64,128], index: 3, kind: output, shape index: {}]  }
   0x1   :  { %v268_v0 = vld [vmem:[%s327_s1] sm:$0xff]   ;;  %v269_v1 = vld [vmem:[%s327_s1 + $0x8] sm:$0xff]   ;;  %v271_v3 = vld [vmem:[%s328_s0 + $0x10] sm:$0xff]  }
   0x2   :  { %252 = vmatprep.subr.bf16.mxu0 %v268_v0  ;;  %264 = vmatprep.subr.bf16.mxu1 %v268_v0  ;;  %v270_v2 = vld [vmem:[%s328_s0] sm:$0xff]   ;;  %v272_v4 = vld [vmem:[%s328_s0 + $0x8] sm:$0xff]   ;;  %v273_v5 = vld [vmem:[%s328_s0 + $0x18] sm:$0xff]  }
   0x3   :  { %253 = vmatpush3.bf16.msra.mxu0 %v268_v0  ;;  %266 = vmatpush3.bf16.msra.mxu1 %v268_v0  ;;  %v196_v6 = vld [vmem:[%s329_s2] ss:$0 sm:$0xff] }
   0x4   :  { %254 = vmatprep.subr.bf16.mxu0 %v269_v1  ;;  %265 = vmatprep.subr.bf16.mxu1 %v269_v1 }
   0x5   :  { %256 = vmatprep.mubr.msk.bf16.mxu0 %vm66_vm0, %v270_v2  ;;  %260 = vmatprep.mubr.msk.bf16.mxu1 %vm66_vm0, %v271_v3 }
   0x7   :  { %255 = vmatpush3.bf16.msra.mxu0 %v269_v1  ;;  %267 = vmatpush3.bf16.msra.mxu1 %v269_v1 }
   0xa   :  { %257 = vmatmul.mubr.msk.bf16.vlgmr.msra.gmra.mrb[0].mxu0 %vm66_vm0, %v272_v4  ;;  %261 = vmatmul.mubr.msk.bf16.vlgmr.msra.gmra.mrb[0].mxu1 %vm66_vm0, %v273_v5 }
  0xdd   :  { %v258_v7 = vpop.f32.mrb[0].mxu0  ;;  %v262_v8 = vpop.f32.mrb[0].mxu1 }
  0xde   :  { %v122_v9 = vadd.f32 %v258_v7, %v196_v6  ;;  %v138_v10 = vadd.f32 %v262_v8, %v196_v6  ;;  %v113_v11 = vpop.f32.mrb[1].mxu0  ;;  %v129_v12 = vpop.f32.mrb[1].mxu1 }
  0xdf   :  { %v114_v13 = vadd.f32 %v196_v6, %v113_v11  ;;  %v130_v14 = vadd.f32 %v196_v6, %v129_v12  ;;  %v259_v15 = vpop.f32.mrb[2].mxu0  ;;  %v263_v16 = vpop.f32.mrb[2].mxu1 }
  0xe0   :  { %v125_v17 = vadd.f32 %v259_v15, %v196_v6  ;;  %v141_v18 = vadd.f32 %v263_v16, %v196_v6  ;;  %v116_v19 = vpop.f32.mrb[3].mxu0  ;;  %v132_v20 = vpop.f32.mrb[3].mxu1  ;;  %v146_v23 = vmax.f32 %v122_v9, 0.0  ;;  %v150_v24 = vmax.f32 %v138_v10, 0.0 }
  0xe1   :  { %v117_v21 = vadd.f32 %v196_v6, %v116_v19  ;;  %v133_v22 = vadd.f32 %v196_v6, %v132_v20  ;;  %v144_v27 = vmax.f32 %v114_v13, 0.0  ;;  %v148_v28 = vmax.f32 %v130_v14, 0.0 }
  0xe2   :  { %v147_v25 = vmax.f32 %v125_v17, 0.0  ;;  %v151_v26 = vmax.f32 %v141_v18, 0.0 }
  0xe3   :  { %v145_v29 = vmax.f32 %v117_v21, 0.0  ;;  %v149_v30 = vmax.f32 %v133_v22, 0.0 }
  0xe4   :  { %v231_v31 = vpack.c.bf16 %v147_v25, %v146_v23  ;;  %v241_v32 = vpack.c.bf16 %v151_v26, %v150_v24 }
  0xe5   :  { %v226_v33 = vpack.c.bf16 %v145_v29, %v144_v27  ;;  %v236_v34 = vpack.c.bf16 %v149_v30, %v148_v28 }
  0xe6   :  { %243 = vst [vmem:[%s330_s3 + $0x8] sm:$0xff] %v231_v31   ;;  %245 = vst [vmem:[%s330_s3 + $0x18] sm:$0xff] %v241_v32  }
  0xe7   :  { %227 = vst [vmem:[%s330_s3] sm:$0xff] %v226_v33   ;;  %244 = vst [vmem:[%s330_s3 + $0x10] sm:$0xff] %v236_v34  }

// kernel: segmentation_forward.12
= control target key start
LH: loop header
LB: loop body
LE: loop exit
PB: predicated region body
PF: predicated region fallthrough
CT: control target
= control target key end

     0   :  { %v376_v1 = vmov 0.0   ;;  %vm377_vm0 = vmmov 0   ;;  %vm185_vm1 = vcmask 261120   ;;  %s467_s1 = inlined_call_operand.vmem [shape: bf16[288,128], index: 1, kind: input, shape index: {}]   ;;  %s468_s0 = inlined_call_operand.vmem [shape: bf16[16,288], index: 0, kind: input, shape index: {}]   ;;  %s469_s2 = inlined_call_operand.vmem [shape: f32[1,128], index: 2, kind: input, shape index: {}]   ;;  %s470_s3 = inlined_call_operand.vmem [shape: bf16[16,128], index: 3, kind: output, shape index: {}]  }
   0x1   :  { %v354_v0 = vld [vmem:[%s467_s1 + $0x40] sm:$0xff]   ;;  %344 = vmatprep.subr.bf16.mxu1 %v376_v1  ;;  %348 = vmatprep.mubr.msk.bf16.mxu1 %vm377_vm0, %v376_v1  ;;  %v356_v3 = vld [vmem:[%s467_s1 + $0x48] sm:$0xff]   ;;  %v358_v5 = vld [vmem:[%s467_s1 + $0x50] sm:$0xff]  }
   0x2   :  { %v355_v2 = vld [vmem:[%s467_s1] sm:$0xff]   ;;  %319 = vmatprep.subr.bf16.mxu0 %v354_v0  ;;  %v357_v4 = vld [vmem:[%s467_s1 + $0x8] sm:$0xff]   ;;  %v359_v6 = vld [vmem:[%s467_s1 + $0x10] sm:$0xff]  }
   0x3   :  { %320 = vmatpush3.bf16.msra.mxu0 %v355_v2  ;;  %v360_v7 = vld [vmem:[%s467_s1 + $0x58] sm:$0xff]   ;;  %v362_v9 = vld [vmem:[%s467_s1 + $0x60] sm:$0xff]   ;;  %v364_v12 = vld [vmem:[%s467_s1 + $0x68] sm:$0xff]  }
   0x4   :  { %321 = vmatprep.subr.bf16.mxu0 %v356_v3  ;;  %v361_v8 = vld [vmem:[%s467_s1 + $0x18] sm:$0xff]   ;;  %v368_v10 = vld [vmem:[%s467_s1 + $0x80] sm:$0xff]   ;;  %v365_v13 = vld [vmem:[%s467_s1 + $0x28] sm:$0xff]  }
   0x5   :  { %v363_v11 = vld [vmem:[%s467_s1 + $0x20] sm:$0xff]   ;;  %345 = vmatpush3.bf16.msra.mxu1 %v368_v10  ;;  %v374_v15 = vld [vmem:[%s467_s1 + $0x88] sm:$0xff]   ;;  %v366_v16 = vld [vmem:[%s467_s1 + $0x70] sm:$0xff]  }
   0x6   :  { %346 = vmatprep.subr.bf16.mxu1 %v376_v1  ;;  %v373_v14 = vld [vmem:[%s468_s0 + $0x4] ss:$12 sps:$4 sm:$0xff]   ;;  %v375_v17 = vld [vmem:[%s468_s0 + $0x8] ss:$12 sps:$4 sm:$0xff]   ;;  %v369_v19 = vld [vmem:[%s467_s1 + $0x78] sm:$0xff]  }
   0x7   :  { %322 = vmatpush3.bf16.msra.mxu0 %v357_v4  ;;  %221 = vmatprep.mubr.bf16.mxu0 %v373_v14  ;;  %v367_v18 = vld [vmem:[%s467_s1 + $0x30] sm:$0xff]   ;;  %v370_v20 = vld [vmem:[%s467_s1 + $0x38] sm:$0xff]   ;;  %v371_v21 = vld [vmem:[%s468_s0] ss:$12 sps:$4 sm:$0xff]  }
   0x8   :  { %323 = vmatprep.subr.bf16.mxu0 %v358_v5  ;;  %v287_v28 = vld [vmem:[%s469_s2] ss:$0 sm:$0xff] }
   0x9   :  { %347 = vmatpush3.bf16.msra.mxu1 %v374_v15 }
   0xb   :  { %324 = vmatpush3.bf16.msra.mxu0 %v359_v6 }
   0xc   :  { %325 = vmatprep.subr.bf16.mxu0 %v360_v7  ;;  %349 = vmatmul.mubr.msk.bf16.vlgmr.msra.gmra.mrb[0].mxu1 %vm185_vm1, %v375_v17 }
   0xf   :  { %326 = vmatpush3.bf16.msra.mxu0 %v361_v8 }
  0x10   :  { %327 = vmatprep.subr.bf16.mxu0 %v362_v9 }
  0x13   :  { %328 = vmatpush3.bf16.msra.mxu0 %v363_v11 }
  0x14   :  { %329 = vmatprep.subr.bf16.mxu0 %v364_v12 }
  0x17   :  { %330 = vmatpush3.bf16.msra.mxu0 %v365_v13 }
  0x18   :  { %331 = vmatprep.subr.bf16.mxu0 %v366_v16 }
  0x1b   :  { %332 = vmatpush3.bf16.msra.mxu0 %v367_v18 }
  0x1c   :  { %333 = vmatprep.subr.bf16.mxu0 %v369_v19 }
  0x1f   :  { %334 = vmatpush3.bf16.msra.mxu0 %v370_v20 }
  0x22   :  { %222 = vmatmul.mubr.bf16.vlgmr.msra.gmra.mrb[0].mxu0 %v371_v21 }
  0xdf   :  { %v264_v22 = vpop.f32.mrb[0].mxu1 }
  0xe0   :  { %v350_v23 = vpop.f32.mrb[1].mxu1 }
  0xe1   :  { %v267_v24 = vpop.f32.mrb[2].mxu1 }
  0xe2   :  { %v351_v25 = vpop.f32.mrb[3].mxu1 }
  0xf5   :  { %v335_v26 = vpop.f32.mrb[0].mxu0 }
  0xf6   :  { %v336_v27 = vpop.f32.mrb[1].mxu0 }
  0xf7   :  { %v337_v29 = vadd.f32 %v336_v27, %v335_v26  ;;  %v338_v30 = vpop.f32.mrb[2].mxu0 }
  0xf8   :  { %v339_v31 = vpop.f32.mrb[3].mxu0 }
  0xf9   :  { %v224_v32 = vadd.f32 %v337_v29, %v287_v28  ;;  %v340_v33 = vadd.f32 %v339_v31, %v338_v30 }
  0xfb   :  { %v265_v34 = vadd.f32 %v264_v22, %v224_v32  ;;  %v227_v35 = vadd.f32 %v340_v33, %v287_v28 }
  0xfd   :  { %v268_v36 = vadd.f32 %v267_v24, %v227_v35  ;;  %v271_v37 = vmax.f32 %v265_v34, 0.0 }
  0xff   :  { %v272_v38 = vmax.f32 %v268_v36, 0.0 }
 0x101   :  { %v317_v39 = vpack.c.bf16 %v272_v38, %v271_v37 }
 0x103   :  { %318 = vst [vmem:[%s470_s3] sm:$0xff] %v317_v39  }

// kernel: segmentation_forward.14
= control target key start
LH: loop header
LB: loop body
LE: loop exit
PB: predicated region body
PF: predicated region fallthrough
CT: control target
= control target key end

     0   :  { %v642_v33 = vmov 0.0   ;;  %vm643_vm0 = vmmov 0   ;;  %vm341_vm1 = vcmask 523264   ;;  %s793_s1 = inlined_call_operand.vmem [shape: bf16[576,128], index: 1, kind: input, shape index: {}]   ;;  %s794_s0 = inlined_call_operand.vmem [shape: bf16[16,576], index: 0, kind: input, shape index: {}]   ;;  %s795_s2 = inlined_call_operand.vmem [shape: f32[1,128], index: 2, kind: input, shape index: {}]   ;;  %s796_s3 = inlined_call_operand.vmem [shape: bf16[16,128], index: 3, kind: output, shape index: {}]  }
   0x1   :  { %v599_v0 = vld [vmem:[%s793_s1 + $0x40] sm:$0xff]   ;;  %v603_v4 = vld [vmem:[%s793_s1 + $0x48] sm:$0xff]   ;;  %v607_v8 = vld [vmem:[%s793_s1 + $0x50] sm:$0xff]  }
   0x2   :  { %v600_v1 = vld [vmem:[%s793_s1] sm:$0xff]   ;;  %536 = vmatprep.subr.bf16.mxu0 %v599_v0  ;;  %v604_v5 = vld [vmem:[%s793_s1 + $0x8] sm:$0xff]   ;;  %v608_v9 = vld [vmem:[%s793_s1 + $0x10] sm:$0xff]  }
   0x3   :  { %v601_v2 = vld [vmem:[%s793_s1 + $0xc0] sm:$0xff]   ;;  %537 = vmatpush3.bf16.msra.mxu0 %v600_v1  ;;  %v605_v6 = vld [vmem:[%s793_s1 + $0xc8] sm:$0xff]   ;;  %v609_v10 = vld [vmem:[%s793_s1 + $0xd0] sm:$0xff]  }
   0x4   :  { %v602_v3 = vld [vmem:[%s793_s1 + $0x80] sm:$0xff]   ;;  %558 = vmatprep.subr.bf16.mxu1 %v601_v2  ;;  %538 = vmatprep.subr.bf16.mxu0 %v603_v4  ;;  %v606_v7 = vld [vmem:[%s793_s1 + $0x88] sm:$0xff]   ;;  %v610_v11 = vld [vmem:[%s793_s1 + $0x90] sm:$0xff]  }
   0x5   :  { %559 = vmatpush3.bf16.msra.mxu1 %v602_v3  ;;  %v611_v12 = vld [vmem:[%s793_s1 + $0x58] sm:$0xff]   ;;  %v615_v16 = vld [vmem:[%s793_s1 + $0x60] sm:$0xff]   ;;  %v619_v20 = vld [vmem:[%s793_s1 + $0x68] sm:$0xff]  }
   0x6   :  { %560 = vmatprep.subr.bf16.mxu1 %v605_v6  ;;  %v612_v13 = vld [vmem:[%s793_s1 + $0x18] sm:$0xff]   ;;  %v616_v17 = vld [vmem:[%s793_s1 + $0x20] sm:$0xff]   ;;  %v620_v21 = vld [vmem:[%s793_s1 + $0x28] sm:$0xff]  }
   0x7   :  { %539 = vmatpush3.bf16.msra.mxu0 %v604_v5  ;;  %v613_v14 = vld [vmem:[%s793_s1 + $0xd8] sm:$0xff]   ;;  %v617_v18 = vld [vmem:[%s793_s1 + $0xe0] sm:$0xff]   ;;  %v621_v22 = vld [vmem:[%s793_s1 + $0xe8] sm:$0xff]  }
   0x8   :  { %540 = vmatprep.subr.bf16.mxu0 %v607_v8  ;;  %v614_v15 = vld [vmem:[%s793_s1 + $0x98] sm:$0xff]   ;;  %v618_v19 = vld [vmem:[%s793_s1 + $0xa0] sm:$0xff]   ;;  %v622_v23 = vld [vmem:[%s793_s1 + $0xa8] sm:$0xff]  }
   0x9   :  { %561 = vmatpush3.bf16.msra.mxu1 %v606_v7  ;;  %v623_v24 = vld [vmem:[%s793_s1 + $0x70] sm:$0xff]   ;;  %v627_v28 = vld [vmem:[%s793_s1 + $0x78] sm:$0xff]   ;;  %v636_v36 = vld [vmem:[%s794_s0 + $0xc] ss:$20 sps:$4 sm:$0xff]  }
   0xa   :  { %562 = vmatprep.subr.bf16.mxu1 %v609_v10  ;;  %v624_v25 = vld [vmem:[%s793_s1 + $0x30] sm:$0xff]   ;;  %v628_v29 = vld [vmem:[%s793_s1 + $0x38] sm:$0xff]   ;;  %v637_v37 = vld [vmem:[%s793_s1 + $0x100] sm:$0xff]   ;;  %418 = vmatprep.mubr.bf16.mxu1 %v636_v36 }
   0xb   :  { %541 = vmatpush3.bf16.msra.mxu0 %v608_v9  ;;  %v625_v26 = vld [vmem:[%s793_s1 + $0xf0] sm:$0xff]   ;;  %v629_v30 = vld [vmem:[%s793_s1 + $0xf8] sm:$0xff]   ;;  %v638_v38 = vld [vmem:[%s793_s1 + $0x108] sm:$0xff]  }
   0xc   :  { %542 = vmatprep.subr.bf16.mxu0 %v611_v12  ;;  %v626_v27 = vld [vmem:[%s793_s1 + $0xb0] sm:$0xff]   ;;  %v632_v32 = vld [vmem:[%s794_s0 + $0x4] ss:$20 sps:$4 sm:$0xff]   ;;  %v634_v35 = vld [vmem:[%s794_s0 + $0x8] ss:$20 sps:$4 sm:$0xff]  }
   0xd   :  { %563 = vmatpush3.bf16.msra.mxu1 %v610_v11  ;;  %v630_v31 = vld [vmem:[%s794_s0] ss:$20 sps:$4 sm:$0xff]   ;;  %v633_v34 = vld [vmem:[%s793_s1 + $0xb8] sm:$0xff]   ;;  %377 = vmatprep.mubr.bf16.mxu0 %v632_v32  ;;  %v641_v41 = vld [vmem:[%s794_s0 + $0x10] ss:$20 sps:$4 sm:$0xff]  }
   0xe   :  { %564 = vmatprep.subr.bf16.mxu1 %v613_v14  ;;  %v639_v39 = vld [vmem:[%s793_s1 + $0x110] sm:$0xff]   ;;  %v640_v40 = vld [vmem:[%s793_s1 + $0x118] sm:$0xff]   ;;  %v484_v43 = vld [vmem:[%s795_s2] ss:$0 sm:$0xff] }
   0xf   :  { %543 = vmatpush3.bf16.msra.mxu0 %v612_v13 }
  0x10   :  { %544 = vmatprep.subr.bf16.mxu0 %v615_v16 }
  0x11   :  { %565 = vmatpush3.bf16.msra.mxu1 %v614_v15 }
  0x12   :  { %566 = vmatprep.subr.bf16.mxu1 %v617_v18 }
  0x13   :  { %545 = vmatpush3.bf16.msra.mxu0 %v616_v17 }
  0x14   :  { %546 = vmatprep.subr.bf16.mxu0 %v619_v20 }
  0x15   :  { %567 = vmatpush3.bf16.msra.mxu1 %v618_v19 }
  0x16   :  { %568 = vmatprep.subr.bf16.mxu1 %v621_v22 }
  0x17   :  { %547 = vmatpush3.bf16.msra.mxu0 %v620_v21 }
  0x18   :  { %548 = vmatprep.subr.bf16.mxu0 %v623_v24 }
  0x19   :  { %569 = vmatpush3.bf16.msra.mxu1 %v622_v23 }
  0x1a   :  { %570 = vmatprep.subr.bf16.mxu1 %v625_v26 }
  0x1b   :  { %549 = vmatpush3.bf16.msra.mxu0 %v624_v25 }
  0x1c   :  { %550 = vmatprep.subr.bf16.mxu0 %v627_v28 }
  0x1d   :  { %571 = vmatpush3.bf16.msra.mxu1 %v626_v27 }
  0x1e   :  { %572 = vmatprep.subr.bf16.mxu1 %v629_v30 }
  0x1f   :  { %551 = vmatpush3.bf16.msra.mxu0 %v628_v29 }
  0x20   :  { %585 = vmatprep.subr.bf16.mxu0 %v642_v33 }
  0x21   :  { %573 = vmatpush3.bf16.msra.mxu1 %v633_v34 }
  0x22   :  { %378 = vmatmul.mubr.bf16.vlgmr.msra.gmra.mrb[0].mxu0 %v630_v31 }
  0x23   :  { %593 = vmatprep.mubr.msk.bf16.mxu0 %vm643_vm0, %v642_v33  ;;  %586 = vmatpush3.bf16.msra.mxu0 %v637_v37 }
  0x24   :  { %419 = vmatmul.mubr.bf16.vlgmr.msra.gmra.mrb[0].mxu1 %v634_v35  ;;  %587 = vmatprep.subr.bf16.mxu0 %v642_v33 }
  0x27   :  { %588 = vmatpush3.bf16.msra.mxu0 %v638_v38 }
  0x28   :  { %589 = vmatprep.subr.bf16.mxu0 %v642_v33 }
  0x2b   :  { %590 = vmatpush3.bf16.msra.mxu0 %v639_v39 }
  0x2c   :  { %591 = vmatprep.subr.bf16.mxu0 %v642_v33 }
  0x2f   :  { %592 = vmatpush3.bf16.msra.mxu0 %v640_v40 }
  0x32   :  { %594 = vmatmul.mubr.msk.bf16.vlgmr.msra.gmra.mrb[4].mxu0 %vm341_vm1, %v641_v41 }
  0xf5   :  { %v552_v42 = vpop.f32.mrb[0].mxu0 }
  0xf6   :  { %v553_v44 = vpop.f32.mrb[1].mxu0 }
  0xf7   :  { %v554_v45 = vadd.f32 %v553_v44, %v552_v42  ;;  %v555_v46 = vpop.f32.mrb[2].mxu0  ;;  %v574_v47 = vpop.f32.mrb[0].mxu1 }
  0xf8   :  { %v556_v48 = vpop.f32.mrb[3].mxu0  ;;  %v575_v51 = vpop.f32.mrb[1].mxu1 }
  0xf9   :  { %v380_v49 = vadd.f32 %v554_v45, %v484_v43  ;;  %v557_v50 = vadd.f32 %v556_v48, %v555_v46  ;;  %v576_v52 = vadd.f32 %v575_v51, %v574_v47  ;;  %v577_v53 = vpop.f32.mrb[2].mxu1 }
  0xfa   :  { %v578_v55 = vpop.f32.mrb[3].mxu1 }
  0xfb   :  { %v383_v54 = vadd.f32 %v557_v50, %v484_v43  ;;  %v579_v56 = vadd.f32 %v578_v55, %v577_v53  ;;  %v421_v57 = vadd.f32 %v576_v52, %v380_v49 }
  0xfd   :  { %v424_v58 = vadd.f32 %v579_v56, %v383_v54 }
 0x105   :  { %v461_v59 = vpop.f32.mrb[4].mxu0 }
 0x106   :  { %v462_v60 = vadd.f32 %v461_v59, %v421_v57  ;;  %v595_v61 = vpop.f32.mrb[5].mxu0 }
 0x107   :  { %v464_v62 = vpop.f32.mrb[6].mxu0 }
 0x108   :  { %v465_v63 = vadd.f32 %v464_v62, %v424_v58  ;;  %v596_v0 = vpop.f32.mrb[7].mxu0  ;;  %v468_v1 = vmax.f32 %v462_v60, 0.0 }
 0x10a   :  { %v469_v2 = vmax.f32 %v465_v63, 0.0 }
 0x10c   :  { %v534_v3 = vpack.c.bf16 %v469_v2, %v468_v1 }
 0x10e   :  { %535 = vst [vmem:[%s796_s3] sm:$0xff] %v534_v3  }

// kernel: segmentation_forward.13
= control target key start
LH: loop header
LB: loop body
LE: loop exit
PB: predicated region body
PF: predicated region fallthrough
CT: control target
= control target key end

     0   :  { %v162_v0 = vmov 0.0   ;;  %vm163_vm0 = vmmov 0   ;;  %vm61_vm1 = vcmask 523264   ;;  %s205_s1 = inlined_call_operand.vmem [shape: bf16[64,128], index: 1, kind: input, shape index: {}]   ;;  %s206_s0 = inlined_call_operand.vmem [shape: bf16[16,64], index: 0, kind: input, shape index: {}]   ;;  %s207_s2 = inlined_call_operand.vmem [shape: f32[1,128], index: 2, kind: input, shape index: {}]   ;;  %s208_s3 = inlined_call_operand.vmem [shape: bf16[16,128], index: 3, kind: output, shape index: {}]  }
   0x1   :  { %143 = vmatprep.subr.bf16.mxu0 %v162_v0  ;;  %v157_v1 = vld [vmem:[%s205_s1] sm:$0xff]   ;;  %151 = vmatprep.mubr.msk.bf16.mxu0 %vm163_vm0, %v162_v0  ;;  %v158_v2 = vld [vmem:[%s205_s1 + $0x8] sm:$0xff]   ;;  %v159_v3 = vld [vmem:[%s205_s1 + $0x10] sm:$0xff]  }
   0x2   :  { %144 = vmatpush3.bf16.msra.mxu0 %v157_v1  ;;  %v160_v4 = vld [vmem:[%s205_s1 + $0x18] sm:$0xff]   ;;  %v161_v5 = vld [vmem:[%s206_s0] sm:$0xff]  }
   0x3   :  { %145 = vmatprep.subr.bf16.mxu0 %v162_v0  ;;  %v122_v6 = vld [vmem:[%s207_s2] ss:$0 sm:$0xff] }
   0x6   :  { %146 = vmatpush3.bf16.msra.mxu0 %v158_v2 }
   0x7   :  { %147 = vmatprep.subr.bf16.mxu0 %v162_v0 }
   0xa   :  { %148 = vmatpush3.bf16.msra.mxu0 %v159_v3 }
   0xb   :  { %149 = vmatprep.subr.bf16.mxu0 %v162_v0 }
   0xe   :  { %150 = vmatpush3.bf16.msra.mxu0 %v160_v4 }
  0x11   :  { %152 = vmatmul.mubr.msk.bf16.vlgmr.msra.gmra.mrb[0].mxu0 %vm61_vm1, %v161_v5 }
  0xe4   :  { %v99_v7 = vpop.f32.mrb[0].mxu0 }
  0xe5   :  { %v100_v8 = vadd.f32 %v122_v6, %v99_v7  ;;  %v153_v9 = vpop.f32.mrb[1].mxu0 }
  0xe6   :  { %v102_v10 = vpop.f32.mrb[2].mxu0 }
  0xe7   :  { %v103_v11 = vadd.f32 %v122_v6, %v102_v10  ;;  %v154_v12 = vpop.f32.mrb[3].mxu0  ;;  %v106_v13 = vmax.f32 %v100_v8, 0.0 }
  0xe9   :  { %v107_v14 = vmax.f32 %v103_v11, 0.0 }
  0xeb   :  { %v136_v15 = vpack.c.bf16 %v107_v14, %v106_v13 }
  0xed   :  { %137 = vst [vmem:[%s208_s3] sm:$0xff] %v136_v15  }

// kernel: segmentation_forward.16
= control target key start
LH: loop header
LB: loop body
LE: loop exit
PB: predicated region body
PF: predicated region fallthrough
CT: control target
= control target key end

     0   :  { %v322_v0 = vmov 0.0   ;;  %vm323_vm0 = vmmov 0   ;;  %vm56_vm1 = vcmask 261120   ;;  %s400_s4 = inlined_call_operand.vmem [shape: bf16[32,128], index: 4, kind: input, shape index: {}]   ;;  %s401_s3 = inlined_call_operand.vmem [shape: bf16[32,128], index: 3, kind: input, shape index: {}]   ;;  %s402_s1 = inlined_call_operand.vmem [shape: bf16[16,32], index: 1, kind: input, shape index: {}]   ;;  %s403_s0 = inlined_call_operand.vmem [shape: bf16[16,32], index: 0, kind: input, shape index: {}]   ;;  %s404_s5 = inlined_call_operand.vmem [shape: bf16[32,128], index: 5, kind: input, shape index: {}]   ;;  %s405_s2 = inlined_call_operand.vmem [shape: bf16[16,32], index: 2, kind: input, shape index: {}]   ;;  %s406_s6 = inlined_call_operand.vmem [shape: f32[1,128], index: 6, kind: input, shape index: {}]   ;;  %s407_s7 = inlined_call_operand.vmem [shape: bf16[16,128], index: 7, kind: output, shape index: {}]  }
   0x1   :  { %287 = vmatprep.subr.bf16.mxu0 %v322_v0  ;;  %295 = vmatprep.subr.bf16.mxu1 %v322_v0  ;;  %v313_v1 = vld [vmem:[%s400_s4] sm:$0xff]   ;;  %v315_v3 = vld [vmem:[%s400_s4 + $0x8] sm:$0xff]  }
   0x2   :  { %v314_v2 = vld [vmem:[%s401_s3] sm:$0xff]   ;;  %291 = vmatprep.mubr.msk.bf16.mxu0 %vm323_vm0, %v322_v0  ;;  %299 = vmatprep.mubr.msk.bf16.mxu1 %vm323_vm0, %v322_v0  ;;  %v316_v4 = vld [vmem:[%s401_s3 + $0x8] sm:$0xff]  }
   0x3   :  { %288 = vmatpush3.bf16.msra.mxu0 %v313_v1  ;;  %296 = vmatpush3.bf16.msra.mxu1 %v314_v2  ;;  %v317_v5 = vld [vmem:[%s402_s1] sm:$0xff]   ;;  %v320_v8 = vld [vmem:[%s404_s5 + $0x8] sm:$0xff]  }
   0x4   :  { %289 = vmatprep.subr.bf16.mxu0 %v322_v0  ;;  %297 = vmatprep.subr.bf16.mxu1 %v322_v0  ;;  %v318_v6 = vld [vmem:[%s403_s0] sm:$0xff]  }
   0x5   :  { %v319_v7 = vld [vmem:[%s404_s5] sm:$0xff]  }
   0x6   :  { %v321_v9 = vld [vmem:[%s405_s2] sm:$0xff]  }
   0x7   :  { %290 = vmatpush3.bf16.msra.mxu0 %v315_v3  ;;  %298 = vmatpush3.bf16.msra.mxu1 %v316_v4  ;;  %v268_v21 = vld [vmem:[%s406_s6] ss:$0 sm:$0xff] }
   0x8   :  { %303 = vmatprep.subr.bf16.mxu0 %v322_v0 }
   0xa   :  { %292 = vmatmul.mubr.msk.bf16.vlgmr.msra.gmra.mrb[0].mxu0 %vm56_vm1, %v317_v5  ;;  %300 = vmatmul.mubr.msk.bf16.vlgmr.msra.gmra.mrb[0].mxu1 %vm56_vm1, %v318_v6 }
   0xb   :  { %304 = vmatpush3.bf16.msra.mxu0 %v319_v7  ;;  %307 = vmatprep.mubr.msk.bf16.mxu0 %vm323_vm0, %v322_v0 }
   0xc   :  { %305 = vmatprep.subr.bf16.mxu0 %v322_v0 }
   0xf   :  { %306 = vmatpush3.bf16.msra.mxu0 %v320_v8 }
  0x12   :  { %308 = vmatmul.mubr.msk.bf16.vlgmr.msra.gmra.mrb[4].mxu0 %vm56_vm1, %v321_v9 }
  0xdd   :  { %v94_v10 = vpop.f32.mrb[0].mxu0  ;;  %v155_v11 = vpop.f32.mrb[0].mxu1 }
  0xde   :  { %v293_v12 = vpop.f32.mrb[1].mxu0  ;;  %v156_v13 = vadd.f32 %v155_v11, %v94_v10  ;;  %v301_v14 = vpop.f32.mrb[1].mxu1 }
  0xdf   :  { %v97_v15 = vpop.f32.mrb[2].mxu0  ;;  %v158_v16 = vpop.f32.mrb[2].mxu1 }
  0xe0   :  { %v294_v17 = vpop.f32.mrb[3].mxu0  ;;  %v159_v18 = vadd.f32 %v158_v16, %v97_v15  ;;  %v302_v19 = vpop.f32.mrb[3].mxu1 }
  0xe5   :  { %v222_v20 = vpop.f32.mrb[4].mxu0 }
  0xe6   :  { %v229_v22 = vadd.f32 %v222_v20, %v156_v13  ;;  %v309_v23 = vpop.f32.mrb[5].mxu0 }
  0xe7   :  { %v225_v24 = vpop.f32.mrb[6].mxu0 }
  0xe8   :  { %v238_v25 = vadd.f32 %v268_v21, %v229_v22  ;;  %v230_v26 = vadd.f32 %v225_v24, %v159_v18  ;;  %v310_v27 = vpop.f32.mrb[7].mxu0 }
  0xea   :  { %v239_v28 = vadd.f32 %v268_v21, %v230_v26  ;;  %v240_v29 = vmax.f32 %v238_v25, 0.0 }
  0xec   :  { %v241_v30 = vmax.f32 %v239_v28, 0.0 }
  0xee   :  { %v276_v31 = vpack.c.bf16 %v241_v30, %v240_v29 }
  0xf0   :  { %277 = vst [vmem:[%s407_s7] sm:$0xff] %v276_v31  }

// kernel: segmentation_forward.19
= control target key start
LH: loop header
LB: loop body
LE: loop exit
PB: predicated region body
PF: predicated region fallthrough
CT: control target
= control target key end

     0   :  { %vm66_vm0 = vcmask 261120   ;;  %s348_s1 = inlined_call_operand.vmem [shape: bf16[32,128], index: 1, kind: input, shape index: {}]   ;;  %s349_s0 = inlined_call_operand.vmem [shape: bf16[64,32], index: 0, kind: input, shape index: {}]   ;;  %s350_s2 = inlined_call_operand.vmem [shape: f32[1,128], index: 2, kind: input, shape index: {}]   ;;  %s351_s3 = inlined_call_operand.vmem [shape: f32[64,128], index: 3, kind: output, shape index: {}]  }
   0x1   :  { %v245_v0 = vld [vmem:[%s348_s1] sm:$0xff]   ;;  %v246_v1 = vld [vmem:[%s348_s1 + $0x8] sm:$0xff]   ;;  %v248_v3 = vld [vmem:[%s349_s0 + $0x10] sm:$0xff]  }
   0x2   :  { %229 = vmatprep.subr.bf16.mxu0 %v245_v0  ;;  %241 = vmatprep.subr.bf16.mxu1 %v245_v0  ;;  %v247_v2 = vld [vmem:[%s349_s0] sm:$0xff]   ;;  %v249_v4 = vld [vmem:[%s349_s0 + $0x8] sm:$0xff]   ;;  %v250_v5 = vld [vmem:[%s349_s0 + $0x18] sm:$0xff]  }
   0x3   :  { %230 = vmatpush3.bf16.msra.mxu0 %v245_v0  ;;  %243 = vmatpush3.bf16.msra.mxu1 %v245_v0  ;;  %v204_v6 = vld [vmem:[%s350_s2] ss:$0 sm:$0xff] }
   0x4   :  { %231 = vmatprep.subr.bf16.mxu0 %v246_v1  ;;  %242 = vmatprep.subr.bf16.mxu1 %v246_v1 }
   0x5   :  { %233 = vmatprep.mubr.msk.bf16.mxu0 %vm66_vm0, %v247_v2  ;;  %237 = vmatprep.mubr.msk.bf16.mxu1 %vm66_vm0, %v248_v3 }
   0x7   :  { %232 = vmatpush3.bf16.msra.mxu0 %v246_v1  ;;  %244 = vmatpush3.bf16.msra.mxu1 %v246_v1 }
   0xa   :  { %234 = vmatmul.mubr.msk.bf16.vlgmr.msra.gmra.mrb[0].mxu0 %vm66_vm0, %v249_v4  ;;  %238 = vmatmul.mubr.msk.bf16.vlgmr.msra.gmra.mrb[0].mxu1 %vm66_vm0, %v250_v5 }
  0xdd   :  { %v235_v7 = vpop.f32.mrb[0].mxu0  ;;  %v239_v8 = vpop.f32.mrb[0].mxu1 }
  0xde   :  { %v122_v9 = vadd.f32 %v235_v7, %v204_v6  ;;  %v138_v10 = vadd.f32 %v239_v8, %v204_v6  ;;  %v113_v11 = vpop.f32.mrb[1].mxu0  ;;  %v129_v12 = vpop.f32.mrb[1].mxu1 }
  0xdf   :  { %v114_v13 = vadd.f32 %v204_v6, %v113_v11  ;;  %v130_v14 = vadd.f32 %v204_v6, %v129_v12  ;;  %v236_v15 = vpop.f32.mrb[2].mxu0  ;;  %v240_v16 = vpop.f32.mrb[2].mxu1 }
  0xe0   :  { %v217_v17 = vmul.f32 -1.442695, %v122_v9  ;;  %v221_v18 = vmul.f32 -1.442695, %v138_v10  ;;  %v125_v19 = vadd.f32 %v236_v15, %v204_v6  ;;  %v141_v20 = vadd.f32 %v240_v16, %v204_v6  ;;  %v116_v21 = vpop.f32.mrb[3].mxu0  ;;  %v132_v22 = vpop.f32.mrb[3].mxu1 }
  0xe1   :  { %v215_v23 = vmul.f32 -1.442695, %v114_v13  ;;  %v219_v24 = vmul.f32 -1.442695, %v130_v14  ;;  %v117_v25 = vadd.f32 %v204_v6, %v116_v21  ;;  %v133_v26 = vadd.f32 %v204_v6, %v132_v22 }
  0xe2   :  { %251 = vpow2.f32 %v217_v17  ;;  %v218_v27 = vmul.f32 -1.442695, %v125_v19  ;;  %v222_v28 = vmul.f32 -1.442695, %v141_v20 }
  0xe3   :  { %253 = vpow2.f32 %v221_v18  ;;  %v216_v29 = vmul.f32 -1.442695, %v117_v25  ;;  %v220_v30 = vmul.f32 -1.442695, %v133_v26 }
  0xe4   :  { %255 = vpow2.f32 %v215_v23 }
  0xe5   :  { %257 = vpow2.f32 %v219_v24 }
  0xe6   :  { %259 = vpow2.f32 %v218_v27 }
  0xe7   :  { %261 = vpow2.f32 %v222_v28 }
  0xe8   :  { %263 = vpow2.f32 %v216_v29 }
  0xe9   :  { %265 = vpow2.f32 %v220_v30 }
  0xec   :  { %v252_v31 = vpop.eup %251 }
  0xed   :  { %v254_v32 = vpop.eup %253  ;;  %v170_v33 = vadd.f32 1.0, %v252_v31 }
  0xee   :  { %v256_v34 = vpop.eup %255  ;;  %v174_v35 = vadd.f32 1.0, %v254_v32 }
  0xef   :  { %v258_v36 = vpop.eup %257  ;;  %267 = vrcp.f32 %v170_v33  ;;  %v168_v37 = vadd.f32 1.0, %v256_v34 }
  0xf0   :  { %v260_v38 = vpop.eup %259  ;;  %269 = vrcp.f32 %v174_v35  ;;  %v172_v39 = vadd.f32 1.0, %v258_v36 }
  0xf1   :  { %v262_v40 = vpop.eup %261  ;;  %271 = vrcp.f32 %v168_v37  ;;  %v171_v41 = vadd.f32 1.0, %v260_v38 }
  0xf2   :  { %v264_v42 = vpop.eup %263  ;;  %273 = vrcp.f32 %v172_v39  ;;  %v175_v43 = vadd.f32 1.0, %v262_v40 }
  0xf3   :  { %v266_v44 = vpop.eup %265  ;;  %275 = vrcp.f32 %v171_v41  ;;  %v169_v45 = vadd.f32 1.0, %v264_v42 }
  0xf4   :  { %277 = vrcp.f32 %v175_v43  ;;  %v173_v46 = vadd.f32 1.0, %v266_v44 }
  0xf5   :  { %279 = vrcp.f32 %v169_v45 }
  0xf6   :  { %281 = vrcp.f32 %v173_v46 }
  0xf9   :  { %v268_v47 = vpop.eup %267 }
  0xfa   :  { %v270_v48 = vpop.eup %269  ;;  %194 = vst [vmem:[%s351_s3 + $0x10] sm:$0xff] %v268_v47 }
  0xfb   :  { %v272_v49 = vpop.eup %271  ;;  %198 = vst [vmem:[%s351_s3 + $0x30] sm:$0xff] %v270_v48 }
  0xfc   :  { %v274_v50 = vpop.eup %273  ;;  %192 = vst [vmem:[%s351_s3] sm:$0xff] %v272_v49 }
  0xfd   :  { %v276_v51 = vpop.eup %275  ;;  %196 = vst [vmem:[%s351_s3 + $0x20] sm:$0xff] %v274_v50 }
  0xfe   :  { %v278_v52 = vpop.eup %277  ;;  %195 = vst [vmem:[%s351_s3 + $0x18] sm:$0xff] %v276_v51 }
  0xff   :  { %v280_v53 = vpop.eup %279  ;;  %199 = vst [vmem:[%s351_s3 + $0x38] sm:$0xff] %v278_v52 }
 0x100   :  { %v282_v54 = vpop.eup %281  ;;  %193 = vst [vmem:[%s351_s3 + $0x8] sm:$0xff] %v280_v53 }
 0x101   :  { %197 = vst [vmem:[%s351_s3 + $0x28] sm:$0xff] %v282_v54 }

// kernel: segmentation_forward.18
= control target key start
LH: loop header
LB: loop body
LE: loop exit
PB: predicated region body
PF: predicated region fallthrough
CT: control target
= control target key end

     0   :  { %v858_v0 = vmov 0   ;;  %vm189_vm0 = vcmask 130048   ;;  %vm435_vm1 = vcmask 261120   ;;  %s1058_s3 = inlined_call_operand.vmem [shape: bf16[144,128], index: 3, kind: input, shape index: {}]   ;;  %s1059_s2 = inlined_call_operand.vmem [shape: bf16[288,128], index: 2, kind: input, shape index: {}]   ;;  %s1060_s0 = inlined_call_operand.vmem [shape: bf16[64,288], index: 0, kind: input, shape index: {}]   ;;  %s1061_s1 = inlined_call_operand.vmem [shape: bf16[64,144], index: 1, kind: input, shape index: {}]   ;;  %s1062_s4 = inlined_call_operand.vmem [shape: f32[1,128], index: 4, kind: input, shape index: {}]   ;;  %s1063_s5 = inlined_call_operand.vmem [shape: bf16[64,128], index: 5, kind: output, shape index: {}]  }
   0x1   :  { %202 = vmatprep.subr.bf16.mxu0 %v858_v0  ;;  %v803_v1 = vld [vmem:[%s1058_s3] sm:$0xff]   ;;  %v806_v4 = vld [vmem:[%s1058_s3 + $0x8] sm:$0xff]   ;;  %v809_v7 = vld [vmem:[%s1058_s3 + $0x10] sm:$0xff]  }
   0x2   :  { %v804_v2 = vld [vmem:[%s1059_s2 + $0x40] sm:$0xff]   ;;  %203 = vmatpush1.bf16.msra.mxu0 %v803_v1  ;;  %v807_v5 = vld [vmem:[%s1059_s2 + $0x48] sm:$0xff]   ;;  %v810_v8 = vld [vmem:[%s1059_s2 + $0x50] sm:$0xff]  }
   0x3   :  { %v805_v3 = vld [vmem:[%s1059_s2] sm:$0xff]   ;;  %740 = vmatprep.subr.bf16.mxu1 %v804_v2  ;;  %204 = vmatprep.subr.bf16.mxu0 %v858_v0  ;;  %v808_v6 = vld [vmem:[%s1059_s2 + $0x8] sm:$0xff]   ;;  %v811_v9 = vld [vmem:[%s1059_s2 + $0x10] sm:$0xff]  }
   0x4   :  { %741 = vmatpush3.bf16.msra.mxu1 %v805_v3  ;;  %v812_v10 = vld [vmem:[%s1058_s3 + $0x18] sm:$0xff]   ;;  %v816_v13 = vld [vmem:[%s1059_s2 + $0x60] sm:$0xff]   ;;  %v819_v16 = vld [vmem:[%s1059_s2 + $0x68] sm:$0xff]  }
   0x5   :  { %742 = vmatprep.subr.bf16.mxu1 %v807_v5  ;;  %v813_v11 = vld [vmem:[%s1059_s2 + $0x58] sm:$0xff]   ;;  %v815_v14 = vld [vmem:[%s1058_s3 + $0x20] sm:$0xff]   ;;  %v818_v17 = vld [vmem:[%s1058_s3 + $0x28] sm:$0xff]  }
   0x6   :  { %205 = vmatpush1.bf16.msra.mxu0 %v806_v4  ;;  %v814_v12 = vld [vmem:[%s1059_s2 + $0x18] sm:$0xff]   ;;  %v817_v15 = vld [vmem:[%s1059_s2 + $0x20] sm:$0xff]   ;;  %v820_v18 = vld [vmem:[%s1059_s2 + $0x28] sm:$0xff]  }
   0x7   :  { %206 = vmatprep.subr.bf16.mxu0 %v858_v0  ;;  %v822_v19 = vld [vmem:[%s1059_s2 + $0x70] sm:$0xff]   ;;  %v825_v22 = vld [vmem:[%s1059_s2 + $0x78] sm:$0xff]   ;;  %v833_v25 = vld [vmem:[%s1061_s1 + $0x4] ss:$8 sps:$4 sm:$0xff]  }
   0x8   :  { %743 = vmatpush3.bf16.msra.mxu1 %v808_v6  ;;  %v821_v20 = vld [vmem:[%s1058_s3 + $0x30] sm:$0xff]   ;;  %v824_v24 = vld [vmem:[%s1058_s3 + $0x38] sm:$0xff]   ;;  %662 = vmatprep.mubr.msk.bf16.mxu0 %vm189_vm0, %v833_v25  ;;  %v834_v27 = vld [vmem:[%s1059_s2 + $0x80] sm:$0xff]  }
   0x9   :  { %744 = vmatprep.subr.bf16.mxu1 %v810_v8  ;;  %v823_v21 = vld [vmem:[%s1059_s2 + $0x30] sm:$0xff]   ;;  %v826_v26 = vld [vmem:[%s1059_s2 + $0x38] sm:$0xff]   ;;  %v830_v28 = vld [vmem:[%s1058_s3 + $0x40] sm:$0xff]  }
   0xa   :  { %207 = vmatpush1.bf16.msra.mxu0 %v809_v7  ;;  %v829_v23 = vld [vmem:[%s1060_s0 + $0x4] ss:$12 sps:$4 sm:$0xff]   ;;  %v827_v29 = vld [vmem:[%s1060_s0] ss:$12 sps:$4 sm:$0xff]   ;;  %v835_v30 = vld [vmem:[%s1060_s0 + $0x1c] ss:$12 sps:$4 sm:$0xff]  }
   0xb   :  { %208 = vmatprep.subr.bf16.mxu0 %v858_v0  ;;  %480 = vmatprep.mubr.bf16.mxu1 %v829_v23  ;;  %v831_v31 = vld [vmem:[%s1061_s1] ss:$8 sps:$4 sm:$0xff]   ;;  %v838_v32 = vld [vmem:[%s1061_s1 + $0x14] ss:$8 sps:$4 sm:$0xff]   ;;  %v837_v34 = vld [vmem:[%s1060_s0 + $0x18] ss:$12 sps:$4 sm:$0xff]  }
   0xc   :  { %745 = vmatpush3.bf16.msra.mxu1 %v811_v9  ;;  %v847_v33 = vld [vmem:[%s1059_s2 + $0x88] sm:$0xff]   ;;  %v841_v35 = vld [vmem:[%s1060_s0 + $0x34] ss:$12 sps:$4 sm:$0xff]   ;;  %v840_v36 = vld [vmem:[%s1061_s1 + $0x10] ss:$8 sps:$4 sm:$0xff]  }
   0xd   :  { %746 = vmatprep.subr.bf16.mxu1 %v813_v11  ;;  %v844_v37 = vld [vmem:[%s1061_s1 + $0x24] ss:$8 sps:$4 sm:$0xff]   ;;  %v843_v38 = vld [vmem:[%s1060_s0 + $0x30] ss:$12 sps:$4 sm:$0xff]   ;;  %v846_v40 = vld [vmem:[%s1061_s1 + $0x20] ss:$8 sps:$4 sm:$0xff]  }
   0xe   :  { %209 = vmatpush1.bf16.msra.mxu0 %v812_v10  ;;  %v848_v39 = vld [vmem:[%s1060_s0 + $0x4c] ss:$12 sps:$4 sm:$0xff]   ;;  %v851_v41 = vld [vmem:[%s1061_s1 + $0x34] ss:$8 sps:$4 sm:$0xff]  }
   0xf   :  { %210 = vmatprep.subr.bf16.mxu0 %v858_v0  ;;  %v850_v42 = vld [vmem:[%s1060_s0 + $0x48] ss:$12 sps:$4 sm:$0xff]   ;;  %v854_v43 = vld [vmem:[%s1060_s0 + $0x38] ss:$12 sps:$4 sm:$0xff]   ;;  %v855_v46 = vld [vmem:[%s1060_s0 + $0x50] ss:$12 sps:$4 sm:$0xff]  }
  0x10   :  { %747 = vmatpush3.bf16.msra.mxu1 %v814_v12  ;;  %v853_v44 = vld [vmem:[%s1061_s1 + $0x30] ss:$8 sps:$4 sm:$0xff]   ;;  %v856_v45 = vld [vmem:[%s1060_s0 + $0x8] ss:$12 sps:$4 sm:$0xff]   ;;  %v857_v47 = vld [vmem:[%s1060_s0 + $0x20] ss:$12 sps:$4 sm:$0xff]  }
  0x11   :  { %748 = vmatprep.subr.bf16.mxu1 %v816_v13 }
  0x12   :  { %211 = vmatpush1.bf16.msra.mxu0 %v815_v14 }
  0x13   :  { %212 = vmatprep.subr.bf16.mxu0 %v858_v0 }
  0x14   :  { %749 = vmatpush3.bf16.msra.mxu1 %v817_v15 }
  0x15   :  { %750 = vmatprep.subr.bf16.mxu1 %v819_v16 }
  0x16   :  { %213 = vmatpush1.bf16.msra.mxu0 %v818_v17 }
  0x17   :  { %214 = vmatprep.subr.bf16.mxu0 %v858_v0 }
  0x18   :  { %751 = vmatpush3.bf16.msra.mxu1 %v820_v18 }
  0x19   :  { %752 = vmatprep.subr.bf16.mxu1 %v822_v19 }
  0x1a   :  { %215 = vmatpush1.bf16.msra.mxu0 %v821_v20 }
  0x1b   :  { %216 = vmatprep.subr.bf16.mxu0 %v858_v0 }
  0x1c   :  { %753 = vmatpush3.bf16.msra.mxu1 %v823_v21 }
  0x1d   :  { %754 = vmatprep.subr.bf16.mxu1 %v825_v22 }
  0x1e   :  { %217 = vmatpush1.bf16.msra.mxu0 %v824_v24 }
  0x1f   :  { %218 = vmatprep.subr.bf16.mxu0 %v858_v0 }
  0x20   :  { %755 = vmatpush3.bf16.msra.mxu1 %v826_v26 }
  0x21   :  { %798 = vmatprep.subr.bf16.mxu1 %v834_v27 }
  0x22   :  { %219 = vmatpush1.bf16.msra.mxu0 %v830_v28 }
  0x23   :  { %481 = vmatmul.mubr.bf16.vlgmr.msra.gmra.mrb[0].mxu1 %v827_v29  ;;  %786 = vmatprep.subr.bf16.mxu0 %v834_v27 }
  0x24   :  { %800 = vmatpush3.bf16.msra.mxu1 %v834_v27  ;;  %488 = vmatprep.mubr.bf16.mxu1 %v835_v30 }
  0x25   :  { %235 = vmatmul.mubr.bf16.vlgmr.msra.gmra.mrb[0].mxu0 %v831_v31  ;;  %799 = vmatprep.subr.bf16.mxu1 %v847_v33 }
  0x26   :  { %787 = vmatpush3.bf16.msra.mxu0 %v834_v27  ;;  %663 = vmatprep.mubr.msk.bf16.mxu0 %vm189_vm0, %v838_v32 }
  0x27   :  { %788 = vmatprep.subr.bf16.mxu0 %v847_v33 }
  0x28   :  { %801 = vmatpush3.bf16.msra.mxu1 %v847_v33 }
  0x2a   :  { %789 = vmatpush3.bf16.msra.mxu0 %v847_v33  ;;  %v700_v33 = vld [vmem:[%s1062_s4] ss:$0 sm:$0xff] }
  0x2b   :  { %489 = vmatmul.mubr.bf16.gmra.mrb[4].mxu1 %v837_v34 }
  0x2c   :  { %496 = vmatprep.mubr.bf16.mxu1 %v841_v35 }
  0x2d   :  { %243 = vmatmul.mubr.bf16.gmra.mrb[4].mxu0 %v840_v36 }
  0x2e   :  { %664 = vmatprep.mubr.msk.bf16.mxu0 %vm189_vm0, %v844_v37 }
  0x33   :  { %497 = vmatmul.mubr.bf16.gmra.mrb[8].mxu1 %v843_v38 }
  0x34   :  { %504 = vmatprep.mubr.bf16.mxu1 %v848_v39 }
  0x35   :  { %251 = vmatmul.mubr.bf16.gmra.mrb[8].mxu0 %v846_v40 }
  0x36   :  { %665 = vmatprep.mubr.msk.bf16.mxu0 %vm189_vm0, %v851_v41 }
  0x3b   :  { %505 = vmatmul.mubr.bf16.gmra.mrb[12].mxu1 %v850_v42 }
  0x3c   :  { %794 = vmatprep.mubr.msk.bf16.mxu1 %vm435_vm1, %v854_v43 }
  0x3d   :  { %259 = vmatmul.mubr.bf16.gmra.mrb[12].mxu0 %v853_v44 }
  0x3e   :  { %790 = vmatprep.mubr.msk.bf16.mxu0 %vm435_vm1, %v856_v45 }
  0x43   :  { %795 = vmatmul.mubr.msk.bf16.vlgmr.msra.gmra.mrb[16].mxu1 %vm435_vm1, %v855_v46 }
  0x45   :  { %791 = vmatmul.mubr.msk.bf16.vlgmr.msra.gmra.mrb[16].mxu0 %vm435_vm1, %v857_v47 }
  0xf6   :  { %v756_v48 = vpop.f32.mrb[0].mxu1 }
  0xf7   :  { %v757_v49 = vpop.f32.mrb[1].mxu1 }
  0xf8   :  { %v758_v50 = vadd.f32 %v757_v49, %v756_v48  ;;  %v759_v51 = vpop.f32.mrb[2].mxu1  ;;  %v236_v52 = vpop.f32.mrb[0].mxu0 }
  0xf9   :  { %v760_v53 = vpop.f32.mrb[3].mxu1  ;;  %v238_v54 = vpop.f32.mrb[1].mxu0 }
  0xfa   :  { %v483_v55 = vadd.f32 %v758_v50, %v236_v52  ;;  %v761_v56 = vadd.f32 %v760_v53, %v759_v51  ;;  %v239_v57 = vpop.f32.mrb[2].mxu0 }
  0xfb   :  { %v241_v58 = vpop.f32.mrb[3].mxu0 }
  0xfc   :  { %v486_v59 = vadd.f32 %v761_v56, %v239_v57 }
  0xfe   :  { %v762_v60 = vpop.f32.mrb[4].mxu1 }
  0xff   :  { %v763_v61 = vpop.f32.mrb[5].mxu1 }
 0x100   :  { %v764_v62 = vadd.f32 %v763_v61, %v762_v60  ;;  %v765_v63 = vpop.f32.mrb[6].mxu1  ;;  %v244_v0 = vpop.f32.mrb[4].mxu0 }
 0x101   :  { %v766_v1 = vpop.f32.mrb[7].mxu1  ;;  %v246_v2 = vpop.f32.mrb[5].mxu0 }
 0x102   :  { %v491_v3 = vadd.f32 %v764_v62, %v244_v0  ;;  %v767_v4 = vadd.f32 %v766_v1, %v765_v63  ;;  %v247_v5 = vpop.f32.mrb[6].mxu0 }
 0x103   :  { %v249_v6 = vpop.f32.mrb[7].mxu0 }
 0x104   :  { %v494_v7 = vadd.f32 %v767_v4, %v247_v5 }
 0x106   :  { %v768_v8 = vpop.f32.mrb[8].mxu1 }
 0x107   :  { %v769_v9 = vpop.f32.mrb[9].mxu1 }
 0x108   :  { %v770_v10 = vadd.f32 %v769_v9, %v768_v8  ;;  %v771_v11 = vpop.f32.mrb[10].mxu1  ;;  %v252_v12 = vpop.f32.mrb[8].mxu0 }
 0x109   :  { %v772_v13 = vpop.f32.mrb[11].mxu1  ;;  %v254_v14 = vpop.f32.mrb[9].mxu0 }
 0x10a   :  { %v499_v15 = vadd.f32 %v770_v10, %v252_v12  ;;  %v773_v16 = vadd.f32 %v772_v13, %v771_v11  ;;  %v255_v17 = vpop.f32.mrb[10].mxu0 }
 0x10b   :  { %v257_v18 = vpop.f32.mrb[11].mxu0 }
 0x10c   :  { %v502_v19 = vadd.f32 %v773_v16, %v255_v17 }
 0x10e   :  { %v774_v20 = vpop.f32.mrb[12].mxu1 }
 0x10f   :  { %v775_v21 = vpop.f32.mrb[13].mxu1 }
 0x110   :  { %v776_v22 = vadd.f32 %v775_v21, %v774_v20  ;;  %v777_v23 = vpop.f32.mrb[14].mxu1  ;;  %v260_v24 = vpop.f32.mrb[12].mxu0 }
 0x111   :  { %v778_v25 = vpop.f32.mrb[15].mxu1  ;;  %v262_v26 = vpop.f32.mrb[13].mxu0 }
 0x112   :  { %v507_v27 = vadd.f32 %v776_v22, %v260_v24  ;;  %v779_v28 = vadd.f32 %v778_v25, %v777_v23  ;;  %v263_v29 = vpop.f32.mrb[14].mxu0 }
 0x113   :  { %v265_v30 = vpop.f32.mrb[15].mxu0 }
 0x114   :  { %v510_v31 = vadd.f32 %v779_v28, %v263_v29 }
 0x116   :  { %v796_v32 = vpop.f32.mrb[16].mxu1 }
 0x117   :  { %v572_v34 = vadd.f32 %v796_v32, %v507_v27  ;;  %v563_v35 = vpop.f32.mrb[17].mxu1 }
 0x118   :  { %v564_v36 = vadd.f32 %v563_v35, %v499_v15  ;;  %v797_v37 = vpop.f32.mrb[18].mxu1  ;;  %v792_v38 = vpop.f32.mrb[16].mxu0 }
 0x119   :  { %v591_v39 = vadd.f32 %v700_v33, %v572_v34  ;;  %v575_v40 = vadd.f32 %v797_v37, %v510_v31  ;;  %v556_v41 = vadd.f32 %v792_v38, %v491_v3  ;;  %v566_v42 = vpop.f32.mrb[19].mxu1  ;;  %v547_v43 = vpop.f32.mrb[17].mxu0 }
 0x11a   :  { %v589_v44 = vadd.f32 %v700_v33, %v564_v36  ;;  %v567_v45 = vadd.f32 %v566_v42, %v502_v19  ;;  %v548_v46 = vadd.f32 %v547_v43, %v483_v55  ;;  %v793_v47 = vpop.f32.mrb[18].mxu0 }
 0x11b   :  { %v592_v48 = vadd.f32 %v700_v33, %v575_v40  ;;  %v587_v49 = vadd.f32 %v700_v33, %v556_v41  ;;  %v559_v50 = vadd.f32 %v793_v47, %v494_v7  ;;  %v550_v51 = vpop.f32.mrb[19].mxu0  ;;  %v599_v56 = vmax.f32 %v591_v39, 0.0 }
 0x11c   :  { %v590_v52 = vadd.f32 %v700_v33, %v567_v45  ;;  %v585_v53 = vadd.f32 %v700_v33, %v548_v46  ;;  %v551_v54 = vadd.f32 %v550_v51, %v486_v59  ;;  %v597_v60 = vmax.f32 %v589_v44, 0.0 }
 0x11d   :  { %v600_v57 = vmax.f32 %v592_v48, 0.0  ;;  %v588_v58 = vadd.f32 %v700_v33, %v559_v50  ;;  %v595_v0 = vmax.f32 %v587_v49, 0.0 }
 0x11e   :  { %v598_v61 = vmax.f32 %v590_v52, 0.0  ;;  %v586_v62 = vadd.f32 %v700_v33, %v551_v54  ;;  %v593_v3 = vmax.f32 %v585_v53, 0.0 }
 0x11f   :  { %v735_v63 = vpack.c.bf16 %v600_v57, %v599_v56  ;;  %v596_v1 = vmax.f32 %v588_v58, 0.0 }
 0x120   :  { %v730_v2 = vpack.c.bf16 %v598_v61, %v597_v60  ;;  %v594_v55 = vmax.f32 %v586_v62, 0.0 }
 0x121   :  { %739 = vst [vmem:[%s1063_s5 + $0x18] sm:$0xff] %v735_v63   ;;  %v725_v4 = vpack.c.bf16 %v596_v1, %v595_v0 }
 0x122   :  { %738 = vst [vmem:[%s1063_s5 + $0x10] sm:$0xff] %v730_v2   ;;  %v720_v59 = vpack.c.bf16 %v594_v55, %v593_v3 }
 0x123   :  { %737 = vst [vmem:[%s1063_s5 + $0x8] sm:$0xff] %v725_v4  }
 0x124   :  { %721 = vst [vmem:[%s1063_s5] sm:$0xff] %v720_v59  }

</bundles_post_ra>
